<compile_context>
chip_gen: v7x
topology: tpu7x:2x2x1
jax: 0.10.0
libtpu: 0.0.40
codegen_flags: <defaults>
</compile_context>

<pallas_src>
import functools

import jax
import jax.numpy as jnp
from jax.experimental import pallas as pl
from jax.experimental.pallas import tpu as pltpu

NUM_CLASSES = 21
NUM_LOC = 4
EPS = 1e-7
NUM_STATS = 9  # [cnt_inter, sum_a, sum_b, cnt_left, sum_left_kl, sum_left_loc,
               #  cnt_right, sum_right_kl, sum_right_loc]


def _round_up(x, m):
    return ((x + m - 1) // m) * m


def _isd_kernel(lam_ref, conf_ref, conft_ref, confi_ref,
                loc_ref, loct_ref, loci_ref, out_ref,
                acc_cnt_i, acc_a, acc_b,
                acc_cnt_l, acc_l_kl, acc_l_loc,
                acc_cnt_r, acc_r_kl, acc_r_loc,
                *, chunk, n_valid):
    j = pl.program_id(1)
    n_j = pl.num_programs(1)
    accs = (acc_cnt_i, acc_a, acc_b, acc_cnt_l, acc_l_kl, acc_l_loc,
            acc_cnt_r, acc_r_kl, acc_r_loc)

    @pl.when(j == 0)
    def _():
        for r in accs:
            r[...] = jnp.zeros_like(r)

    f32 = jnp.float32
    lam = lam_ref[0]
    one_minus_lam = 1.0 - lam
    tn = conf_ref.shape[-1]
    n_chunks = tn // chunk
    col_base = j * tn
    lane = jax.lax.broadcasted_iota(jnp.int32, (1, chunk), 1)  # hoisted

    @pl.loop(0, n_chunks)
    def _(c):
        c0 = pl.multiple_of(c * chunk, chunk)
        sl = pl.ds(c0, chunk)
        valid = (col_base + c0 + lane) < n_valid               # (1, chunk) bool

        conf = conf_ref[:, sl].astype(f32)                     # (C, chunk)
        conft = conft_ref[:, sl].astype(f32)

        # Foreground-vs-background masks.  max over ALL classes > class 0 is
        # equivalent to max over classes 1..C-1 > class 0.
        left_mask = jnp.logical_and(
            jnp.max(conf, axis=0, keepdims=True) > conf[0:1, :], valid)
        right_mask = jnp.logical_and(
            jnp.max(conft, axis=0, keepdims=True) > conft[0:1, :], valid)
        inter = jnp.logical_and(left_mask, right_mask)
        only_left = jnp.logical_and(left_mask, jnp.logical_not(right_mask))
        only_right = jnp.logical_and(right_mask, jnp.logical_not(left_mask))

        acc_cnt_i[...] += inter.astype(f32)
        acc_cnt_l[...] += only_left.astype(f32)
        acc_cnt_r[...] += only_right.astype(f32)

        confi = confi_ref[:, sl].astype(f32)
        interp = confi + EPS
        log_interp = jnp.log(interp)
        zero = jnp.zeros((1, chunk), f32)

        # --- intersection: symmetric KL between mix(lam) and interpolation ---
        mixed = lam * conf + one_minus_lam * conft + EPS
        diff = log_interp - jnp.log(mixed)
        a_col = jnp.sum(interp * diff, axis=0, keepdims=True)
        b_col = -jnp.sum(mixed * diff, axis=0, keepdims=True)
        # where() also guards against NaN/garbage from the padded edge block.
        acc_a[...] += jnp.where(inter, a_col, zero)
        acc_b[...] += jnp.where(inter, b_col, zero)

        # --- only-left: KL(interp || conf) ---
        conf_e = conf + EPS
        left_col = jnp.sum(conf_e * (jnp.log(conf_e) - log_interp),
                           axis=0, keepdims=True)
        acc_l_kl[...] += jnp.where(only_left, left_col, zero)

        # --- only-right: KL(interp || conf_temp) ---
        conft_e = conft + EPS
        right_col = jnp.sum(conft_e * (jnp.log(conft_e) - log_interp),
                            axis=0, keepdims=True)
        acc_r_kl[...] += jnp.where(only_right, right_col, zero)

        # --- loc squared-error terms ---
        loc = loc_ref[:, sl].astype(f32)
        loci = loci_ref[:, sl].astype(f32)
        dl = loci - loc
        left_loc_col = jnp.sum(dl * dl, axis=0, keepdims=True)
        acc_l_loc[...] += jnp.where(only_left, left_loc_col, zero)

        loct = loct_ref[:, sl].astype(f32)
        dr = loci - loct
        right_loc_col = jnp.sum(dr * dr, axis=0, keepdims=True)
        acc_r_loc[...] += jnp.where(only_right, right_loc_col, zero)

    @pl.when(j == n_j - 1)
    def _():
        rows = [jnp.broadcast_to(jnp.sum(r[...], axis=1, keepdims=True),
                                 (1, 128)) for r in accs]
        out_ref[...] = jnp.concatenate(rows, axis=0)           # (9, 128), once


@functools.partial(jax.jit,
                   static_argnames=("batch_size", "tile_cols", "chunk",
                                    "storage_dtype"))
def isd_loss(lam, conf, conf_flip, loc, loc_flip,
             conf_shuffle, conf_interpolation, loc_shuffle, loc_interpolation,
             *, batch_size, tile_cols=16384, chunk=256,
             storage_dtype=jnp.bfloat16):
    # conf_flip / loc_flip are unused by the original forward pass.
    del conf_flip, loc_flip
    B, N, C = conf.shape
    assert C == NUM_CLASSES and loc.shape == (B, N, NUM_LOC)
    assert batch_size == B, "batch_size must equal conf.shape[0] for the half-swap"
    assert B % 2 == 0, "batch half-swap requires an even batch"
    assert chunk % 128 == 0
    half = B // 2

    f32 = jnp.float32
    sdt = jnp.dtype(storage_dtype)

    # Effective chunk / tile sizes (no host-side padding; ragged tail masked
    # in-kernel).
    chunk_eff = int(min(chunk, _round_up(N, 128)))
    tn = int(min(_round_up(tile_cols, chunk_eff), _round_up(N, chunk_eff)))
    n_j = pl.cdiv(N, tn)

    def prep(x):
        # Single fused pass: cast to storage dtype + transpose to lane-dense
        # (B, feat, N).  No pad, no batch-swap copy.
        return jnp.transpose(x.astype(sdt), (0, 2, 1))

    confT = prep(conf)
    confsT = prep(conf_shuffle)          # swap handled by index_map
    confiT = prep(conf_interpolation)
    locT = prep(loc)
    locsT = prep(loc_shuffle)            # swap handled by index_map
    lociT = prep(loc_interpolation)
    lam_arr = jnp.full((1,), lam, dtype=f32)

    conf_spec = pl.BlockSpec((None, C, tn), lambda b, j: (b, 0, j))
    conft_spec = pl.BlockSpec((None, C, tn),
                              lambda b, j: ((b + half) % B, 0, j))
    loc_spec = pl.BlockSpec((None, NUM_LOC, tn), lambda b, j: (b, 0, j))
    loct_spec = pl.BlockSpec((None, NUM_LOC, tn),
                             lambda b, j: ((b + half) % B, 0, j))

    kernel = functools.partial(_isd_kernel, chunk=chunk_eff, n_valid=N)

    out = pl.pallas_call(
        kernel,
        out_shape=jax.ShapeDtypeStruct((B, NUM_STATS, 128), f32),
        grid_spec=pltpu.PrefetchScalarGridSpec(
            num_scalar_prefetch=0,
            grid=(B, n_j),
            in_specs=[
                pl.BlockSpec(memory_space=pltpu.MemorySpace.SMEM),  # lam
                conf_spec, conft_spec, conf_spec,
                loc_spec, loct_spec, loc_spec,
            ],
            out_specs=pl.BlockSpec((None, NUM_STATS, 128),
                                   lambda b, j: (b, 0, 0)),
            scratch_shapes=[pltpu.VMEM((1, chunk_eff), f32)
                            for _ in range(NUM_STATS)],
        ),
        compiler_params=pltpu.CompilerParams(
            dimension_semantics=("parallel", "arbitrary")),
    )(lam_arr, confT, confsT, confiT, locT, locsT, lociT)

    s = jnp.sum(out[:, :, 0], axis=0)  # (NUM_STATS,) partial sums over batch
    cnt_i, sum_a, sum_b = s[0], s[1], s[2]
    cnt_l, sum_l_kl, sum_l_loc = s[3], s[4], s[5]
    cnt_r, sum_r_kl, sum_r_loc = s[6], s[7], s[8]

    safe_i = jnp.maximum(cnt_i, 1.0)
    safe_l = jnp.maximum(cnt_l, 1.0)
    safe_r = jnp.maximum(cnt_r, 1.0)

    # Mirrors the PyTorch `if mask.sum() > 0:` branches.
    interp_loss = jnp.where(cnt_i > 0,
                            (sum_a / safe_i + sum_b / safe_i) / 2.0, 0.0)
    left_loss = jnp.where(cnt_l > 0,
                          sum_l_kl / safe_l + sum_l_loc / (4.0 * safe_l), 0.0)
    right_loss = jnp.where(cnt_r > 0,
                           sum_r_kl / safe_r + sum_r_loc / (4.0 * safe_r), 0.0)
    fixmatch_loss = left_loss + right_loss
    return interp_loss, fixmatch_loss


def isd_loss_ref(lam, conf, loc, conf_shuffle, conf_interp, loc_shuffle,
                 loc_interp, batch_size):
    """Pure-JAX mirror of the PyTorch forward (for correctness check)."""
    half = batch_size // 2
    conf_temp = jnp.concatenate([conf_shuffle[half:], conf_shuffle[:half]], 0)
    loc_temp = jnp.concatenate([loc_shuffle[half:], loc_shuffle[:half]], 0)

    left_mask = jnp.max(conf[:, :, 1:], axis=2) > conf[:, :, 0]
    right_mask = jnp.max(conf_temp[:, :, 1:], axis=2) > conf_temp[:, :, 0]
    inter = (left_mask & right_mask).astype(jnp.float32)
    only_l = (left_mask & ~right_mask).astype(jnp.float32)
    only_r = (right_mask & ~left_mask).astype(jnp.float32)

    def kld(log_input, target):  # nn.KLDivLoss(reduce=False)
        return target * (jnp.log(target) - log_input)

    mixed = lam * conf + (1 - lam) * conf_temp + EPS
    interp = conf_interp + EPS
    a_row = kld(jnp.log(mixed), interp).sum(-1)
    b_row = kld(jnp.log(interp), mixed).sum(-1)
    cnt_i = inter.sum()
    interp_loss = jnp.where(
        cnt_i > 0,
        (((inter * a_row).sum() / jnp.maximum(cnt_i, 1)) +
         ((inter * b_row).sum() / jnp.maximum(cnt_i, 1))) / 2.0, 0.0)

    def side(mask, conf_side, loc_side):
        cnt = mask.sum()
        kl_row = kld(jnp.log(conf_interp + EPS), conf_side + EPS).sum(-1)
        conf_loss = (mask * kl_row).sum() / jnp.maximum(cnt, 1)
        sq = ((loc_interp - loc_side) ** 2).sum(-1)
        loc_loss = (mask * sq).sum() / (4.0 * jnp.maximum(cnt, 1))
        return jnp.where(cnt > 0, conf_loss + loc_loss, 0.0)

    fixmatch = side(only_l, conf, loc) + side(only_r, conf_temp, loc_temp)
    return interp_loss, fixmatch


if __name__ == "__main__":
    key = jax.random.PRNGKey(0)
    # (B, N) cases: multi-chunk tile with a ragged tail, and a tiny ragged case.
    for B, N in [(4, 384), (2, 100)]:
        ks = jax.random.split(jax.random.fold_in(key, 131 * B + N), 8)
        conf = jax.nn.softmax(jax.random.normal(ks[0], (B, N, NUM_CLASSES)), -1)
        conf_flip = jax.nn.softmax(jax.random.normal(ks[1], (B, N, NUM_CLASSES)), -1)
        conf_shuffle = jax.nn.softmax(jax.random.normal(ks[2], (B, N, NUM_CLASSES)), -1)
        conf_interp = jax.nn.softmax(jax.random.normal(ks[3], (B, N, NUM_CLASSES)), -1)
        loc = jax.random.normal(ks[4], (B, N, NUM_LOC))
        loc_flip = jax.random.normal(ks[5], (B, N, NUM_LOC))
        loc_shuffle = jax.random.normal(ks[6], (B, N, NUM_LOC))
        loc_interp = jax.random.normal(ks[7], (B, N, NUM_LOC))
        lam = 0.3

        # Exact-parity check: f32 storage vs f32 reference.
        li, lf = isd_loss(
            lam, conf, conf_flip, loc, loc_flip,
            conf_shuffle, conf_interp, loc_shuffle, loc_interp,
            batch_size=B, storage_dtype=jnp.float32)
        jax.block_until_ready((li, lf))
        ref_i, ref_f = isd_loss_ref(lam, conf, loc, conf_shuffle, conf_interp,
                                    loc_shuffle, loc_interp, B)
        assert jnp.allclose(li, ref_i, rtol=1e-3, atol=1e-4), (B, N, li, ref_i)
        assert jnp.allclose(lf, ref_f, rtol=1e-3, atol=1e-4), (B, N, lf, ref_f)

        # Default bf16 storage vs reference computed on bf16-rounded inputs
        # (avoids spurious mask flips on near-ties in the random test data).
        bi, bf = isd_loss(
            lam, conf, conf_flip, loc, loc_flip,
            conf_shuffle, conf_interp, loc_shuffle, loc_interp,
            batch_size=B)
        jax.block_until_ready((bi, bf))

        def r16(x):
            return x.astype(jnp.bfloat16).astype(jnp.float32)

        rb_i, rb_f = isd_loss_ref(lam, r16(conf), r16(loc), r16(conf_shuffle),
                                  r16(conf_interp), r16(loc_shuffle),
                                  r16(loc_interp), B)
        assert jnp.allclose(bi, rb_i, rtol=2e-3, atol=2e-4), (B, N, bi, rb_i)
        assert jnp.allclose(bf, rb_f, rtol=2e-3, atol=2e-4), (B, N, bf, rb_f)

    print("KERNEL_OK")
</pallas_src>

<mosaic_0001>
module attributes {stable_mosaic.version = 11 : i64} {
  func.func @_isd_kernel(%arg0: i32, %arg1: i32, %arg2: memref<1xf32, #tpu.memory_space<smem>>, %arg3: memref<1x21x512xf32, #tpu.memory_space<vmem>>, %arg4: memref<1x21x512xf32, #tpu.memory_space<vmem>>, %arg5: memref<1x21x512xf32, #tpu.memory_space<vmem>>, %arg6: memref<1x4x512xf32, #tpu.memory_space<vmem>>, %arg7: memref<1x4x512xf32, #tpu.memory_space<vmem>>, %arg8: memref<1x4x512xf32, #tpu.memory_space<vmem>>, %arg9: memref<1x9x128xf32, #tpu.memory_space<vmem>>, %arg10: memref<1x256xf32, #tpu.memory_space<vmem>>, %arg11: memref<1x256xf32, #tpu.memory_space<vmem>>, %arg12: memref<1x256xf32, #tpu.memory_space<vmem>>, %arg13: memref<1x256xf32, #tpu.memory_space<vmem>>, %arg14: memref<1x256xf32, #tpu.memory_space<vmem>>, %arg15: memref<1x256xf32, #tpu.memory_space<vmem>>, %arg16: memref<1x256xf32, #tpu.memory_space<vmem>>, %arg17: memref<1x256xf32, #tpu.memory_space<vmem>>, %arg18: memref<1x256xf32, #tpu.memory_space<vmem>>) attributes {dimension_semantics = [#tpu.dimension_semantics<parallel>, #tpu.dimension_semantics<arbitrary>], iteration_bounds = array<i64: 4, 1>, scalar_prefetch = 0 : i64, scratch_operands = 9 : i64, tpu.core_type = #tpu.core_type<tc>, window_params = [{transform_indices = @transform_0, window_bounds = array<i64: 1>}, {transform_indices = @transform_1, window_bounds = array<i64: 1, 21, 512>}, {transform_indices = @transform_2, window_bounds = array<i64: 1, 21, 512>}, {transform_indices = @transform_3, window_bounds = array<i64: 1, 21, 512>}, {transform_indices = @transform_4, window_bounds = array<i64: 1, 4, 512>}, {transform_indices = @transform_5, window_bounds = array<i64: 1, 4, 512>}, {transform_indices = @transform_6, window_bounds = array<i64: 1, 4, 512>}, {transform_indices = @transform_7, window_bounds = array<i64: 1, 9, 128>}]} {
    %c0_i32 = arith.constant 0 : i32
    %0 = arith.cmpi eq, %arg1, %c0_i32 : i32
    %1 = arith.extui %0 : i1 to i32
    %c0_i32_0 = arith.constant 0 : i32
    %2 = arith.cmpi ne, %1, %c0_i32_0 : i32
    scf.if %2 {
      %cst_5 = arith.constant 0.000000e+00 : f32
      %11 = vector.broadcast %cst_5 : f32 to vector<1x256xf32>
      %c0_6 = arith.constant 0 : index
      %c0_7 = arith.constant 0 : index
      %12 = vector.load %arg10[%c0_6, %c0_7] : memref<1x256xf32, #tpu.memory_space<vmem>>, vector<1x256xf32>
      tpu.vector_store %arg10[%c0_6, %c0_7], %11 {strides = array<i32>} : memref<1x256xf32, #tpu.memory_space<vmem>>, vector<1x256xf32>,
      %cst_8 = arith.constant 0.000000e+00 : f32
      %13 = vector.broadcast %cst_8 : f32 to vector<1x256xf32>
      %c0_9 = arith.constant 0 : index
      %c0_10 = arith.constant 0 : index
      %14 = vector.load %arg11[%c0_9, %c0_10] : memref<1x256xf32, #tpu.memory_space<vmem>>, vector<1x256xf32>
      tpu.vector_store %arg11[%c0_9, %c0_10], %13 {strides = array<i32>} : memref<1x256xf32, #tpu.memory_space<vmem>>, vector<1x256xf32>,
      %cst_11 = arith.constant 0.000000e+00 : f32
      %15 = vector.broadcast %cst_11 : f32 to vector<1x256xf32>
      %c0_12 = arith.constant 0 : index
      %c0_13 = arith.constant 0 : index
      %16 = vector.load %arg12[%c0_12, %c0_13] : memref<1x256xf32, #tpu.memory_space<vmem>>, vector<1x256xf32>
      tpu.vector_store %arg12[%c0_12, %c0_13], %15 {strides = array<i32>} : memref<1x256xf32, #tpu.memory_space<vmem>>, vector<1x256xf32>,
      %cst_14 = arith.constant 0.000000e+00 : f32
      %17 = vector.broadcast %cst_14 : f32 to vector<1x256xf32>
      %c0_15 = arith.constant 0 : index
      %c0_16 = arith.constant 0 : index
      %18 = vector.load %arg13[%c0_15, %c0_16] : memref<1x256xf32, #tpu.memory_space<vmem>>, vector<1x256xf32>
      tpu.vector_store %arg13[%c0_15, %c0_16], %17 {strides = array<i32>} : memref<1x256xf32, #tpu.memory_space<vmem>>, vector<1x256xf32>,
      %cst_17 = arith.constant 0.000000e+00 : f32
      %19 = vector.broadcast %cst_17 : f32 to vector<1x256xf32>
      %c0_18 = arith.constant 0 : index
      %c0_19 = arith.constant 0 : index
      %20 = vector.load %arg14[%c0_18, %c0_19] : memref<1x256xf32, #tpu.memory_space<vmem>>, vector<1x256xf32>
      tpu.vector_store %arg14[%c0_18, %c0_19], %19 {strides = array<i32>} : memref<1x256xf32, #tpu.memory_space<vmem>>, vector<1x256xf32>,
      %cst_20 = arith.constant 0.000000e+00 : f32
      %21 = vector.broadcast %cst_20 : f32 to vector<1x256xf32>
      %c0_21 = arith.constant 0 : index
      %c0_22 = arith.constant 0 : index
      %22 = vector.load %arg15[%c0_21, %c0_22] : memref<1x256xf32, #tpu.memory_space<vmem>>, vector<1x256xf32>
      tpu.vector_store %arg15[%c0_21, %c0_22], %21 {strides = array<i32>} : memref<1x256xf32, #tpu.memory_space<vmem>>, vector<1x256xf32>,
      %cst_23 = arith.constant 0.000000e+00 : f32
      %23 = vector.broadcast %cst_23 : f32 to vector<1x256xf32>
      %c0_24 = arith.constant 0 : index
      %c0_25 = arith.constant 0 : index
      %24 = vector.load %arg16[%c0_24, %c0_25] : memref<1x256xf32, #tpu.memory_space<vmem>>, vector<1x256xf32>
      tpu.vector_store %arg16[%c0_24, %c0_25], %23 {strides = array<i32>} : memref<1x256xf32, #tpu.memory_space<vmem>>, vector<1x256xf32>,
      %cst_26 = arith.constant 0.000000e+00 : f32
      %25 = vector.broadcast %cst_26 : f32 to vector<1x256xf32>
      %c0_27 = arith.constant 0 : index
      %c0_28 = arith.constant 0 : index
      %26 = vector.load %arg17[%c0_27, %c0_28] : memref<1x256xf32, #tpu.memory_space<vmem>>, vector<1x256xf32>
      tpu.vector_store %arg17[%c0_27, %c0_28], %25 {strides = array<i32>} : memref<1x256xf32, #tpu.memory_space<vmem>>, vector<1x256xf32>,
      %cst_29 = arith.constant 0.000000e+00 : f32
      %27 = vector.broadcast %cst_29 : f32 to vector<1x256xf32>
      %c0_30 = arith.constant 0 : index
      %c0_31 = arith.constant 0 : index
      %28 = vector.load %arg18[%c0_30, %c0_31] : memref<1x256xf32, #tpu.memory_space<vmem>>, vector<1x256xf32>
      tpu.vector_store %arg18[%c0_30, %c0_31], %27 {strides = array<i32>} : memref<1x256xf32, #tpu.memory_space<vmem>>, vector<1x256xf32>,
    } else {
    }
    %c0 = arith.constant 0 : index
    %3 = memref.load %arg2[%c0] : memref<1xf32, #tpu.memory_space<smem>>
    %cst = arith.constant 1.000000e+00 : f32
    %4 = arith.subf %cst, %3 : f32
    %c512_i32 = arith.constant 512 : i32
    %5 = arith.muli %arg1, %c512_i32 : i32
    %6 = tpu.iota {dimensions = array<i32: 1>} : vector<1x256xi32>
    %c0_i32_1 = arith.constant 0 : i32
    %c2_i32 = arith.constant 2 : i32
    %7 = arith.addi %c0_i32_1, %c2_i32 : i32
    %c1_i32 = arith.constant 1 : i32
    scf.for %arg19 = %c0_i32_1 to %7 step %c1_i32  : i32 {
      %c1_i32_5 = arith.constant 1 : i32
      %11 = arith.muli %arg19, %c1_i32_5 : i32
      %c0_i32_6 = arith.constant 0 : i32
      %12 = arith.addi %c0_i32_6, %11 : i32
      %c256_i32 = arith.constant 256 : i32
      %13 = arith.muli %12, %c256_i32 : i32
      %14 = tpu.assume_multiple %13, 256 : i32
      %15 = arith.addi %5, %14 : i32
      %16 = vector.broadcast %15 : i32 to vector<1x256xi32>
      %17 = arith.addi %16, %6 : vector<1x256xi32>
      %c384_i32 = arith.constant 384 : i32
      %18 = vector.broadcast %c384_i32 : i32 to vector<1x256xi32>
      %19 = arith.cmpi slt, %17, %18 : vector<1x256xi32>
      %c0_7 = arith.constant 0 : index
      %c0_8 = arith.constant 0 : index
      %20 = arith.index_cast %14 : i32 to index
      %21 = vector.load %arg3[%c0_7, %c0_8, %20] : memref<1x21x512xf32, #tpu.memory_space<vmem>>, vector<1x21x256xf32>
      %22 = vector.shape_cast %21 : vector<1x21x256xf32> to vector<21x256xf32>
      %c0_9 = arith.constant 0 : index
      %c0_10 = arith.constant 0 : index
      %23 = arith.index_cast %14 : i32 to index
      %24 = vector.load %arg4[%c0_9, %c0_10, %23] : memref<1x21x512xf32, #tpu.memory_space<vmem>>, vector<1x21x256xf32>
      %25 = vector.shape_cast %24 : vector<1x21x256xf32> to vector<21x256xf32>
      %cst_11 = arith.constant dense<0xFF800000> : vector<256xf32>
      %26 = vector.multi_reduction <maximumf>, %22, %cst_11 [0] : vector<21x256xf32> to vector<256xf32>
      %27 = vector.shape_cast %26 : vector<256xf32> to vector<1x256xf32>
      %28 = vector.extract_strided_slice %22 {offsets = [0, 0], sizes = [1, 256], strides = [1, 1]} : vector<21x256xf32> to vector<1x256xf32>
      %29 = arith.cmpf ogt, %27, %28 : vector<1x256xf32>
      %30 = arith.andi %29, %19 : vector<1x256xi1>
      %cst_12 = arith.constant dense<0xFF800000> : vector<256xf32>
      %31 = vector.multi_reduction <maximumf>, %25, %cst_12 [0] : vector<21x256xf32> to vector<256xf32>
      %32 = vector.shape_cast %31 : vector<256xf32> to vector<1x256xf32>
      %33 = vector.extract_strided_slice %25 {offsets = [0, 0], sizes = [1, 256], strides = [1, 1]} : vector<21x256xf32> to vector<1x256xf32>
      %34 = arith.cmpf ogt, %32, %33 : vector<1x256xf32>
      %35 = arith.andi %34, %19 : vector<1x256xi1>
      %36 = arith.andi %30, %35 : vector<1x256xi1>
      %cst_13 = arith.constant dense<true> : vector<1x256xi1>
      %37 = arith.xori %35, %cst_13 : vector<1x256xi1>
      %38 = arith.andi %30, %37 : vector<1x256xi1>
      %cst_14 = arith.constant dense<true> : vector<1x256xi1>
      %39 = arith.xori %30, %cst_14 : vector<1x256xi1>
      %40 = arith.andi %35, %39 : vector<1x256xi1>
      %c0_15 = arith.constant 0 : index
      %c0_16 = arith.constant 0 : index
      %41 = vector.load %arg10[%c0_15, %c0_16] : memref<1x256xf32, #tpu.memory_space<vmem>>, vector<1x256xf32>
      %42 = arith.extui %36 : vector<1x256xi1> to vector<1x256xi32>
      %43 = arith.sitofp %42 : vector<1x256xi32> to vector<1x256xf32>
      %44 = arith.addf %41, %43 : vector<1x256xf32>
      %c0_17 = arith.constant 0 : index
      %c0_18 = arith.constant 0 : index
      %45 = vector.load %arg10[%c0_17, %c0_18] : memref<1x256xf32, #tpu.memory_space<vmem>>, vector<1x256xf32>
      tpu.vector_store %arg10[%c0_17, %c0_18], %44 {strides = array<i32>} : memref<1x256xf32, #tpu.memory_space<vmem>>, vector<1x256xf32>,
      %c0_19 = arith.constant 0 : index
      %c0_20 = arith.constant 0 : index
      %46 = vector.load %arg13[%c0_19, %c0_20] : memref<1x256xf32, #tpu.memory_space<vmem>>, vector<1x256xf32>
      %47 = arith.extui %38 : vector<1x256xi1> to vector<1x256xi32>
      %48 = arith.sitofp %47 : vector<1x256xi32> to vector<1x256xf32>
      %49 = arith.addf %46, %48 : vector<1x256xf32>
      %c0_21 = arith.constant 0 : index
      %c0_22 = arith.constant 0 : index
      %50 = vector.load %arg13[%c0_21, %c0_22] : memref<1x256xf32, #tpu.memory_space<vmem>>, vector<1x256xf32>
      tpu.vector_store %arg13[%c0_21, %c0_22], %49 {strides = array<i32>} : memref<1x256xf32, #tpu.memory_space<vmem>>, vector<1x256xf32>,
      %c0_23 = arith.constant 0 : index
      %c0_24 = arith.constant 0 : index
      %51 = vector.load %arg16[%c0_23, %c0_24] : memref<1x256xf32, #tpu.memory_space<vmem>>, vector<1x256xf32>
      %52 = arith.extui %40 : vector<1x256xi1> to vector<1x256xi32>
      %53 = arith.sitofp %52 : vector<1x256xi32> to vector<1x256xf32>
      %54 = arith.addf %51, %53 : vector<1x256xf32>
      %c0_25 = arith.constant 0 : index
      %c0_26 = arith.constant 0 : index
      %55 = vector.load %arg16[%c0_25, %c0_26] : memref<1x256xf32, #tpu.memory_space<vmem>>, vector<1x256xf32>
      tpu.vector_store %arg16[%c0_25, %c0_26], %54 {strides = array<i32>} : memref<1x256xf32, #tpu.memory_space<vmem>>, vector<1x256xf32>,
      %c0_27 = arith.constant 0 : index
      %c0_28 = arith.constant 0 : index
      %56 = arith.index_cast %14 : i32 to index
      %57 = vector.load %arg5[%c0_27, %c0_28, %56] : memref<1x21x512xf32, #tpu.memory_space<vmem>>, vector<1x21x256xf32>
      %58 = vector.shape_cast %57 : vector<1x21x256xf32> to vector<21x256xf32>
      %cst_29 = arith.constant 1.000000e-07 : f32
      %59 = vector.broadcast %cst_29 : f32 to vector<21x256xf32>
      %60 = arith.addf %58, %59 : vector<21x256xf32>
      %61 = math.log %60 : vector<21x256xf32>
      %cst_30 = arith.constant 0.000000e+00 : f32
      %62 = vector.broadcast %cst_30 : f32 to vector<1x256xf32>
      %63 = vector.broadcast %3 : f32 to vector<21x256xf32>
      %64 = arith.mulf %63, %22 : vector<21x256xf32>
      %65 = vector.broadcast %4 : f32 to vector<21x256xf32>
      %66 = arith.mulf %65, %25 : vector<21x256xf32>
      %67 = arith.addf %64, %66 : vector<21x256xf32>
      %cst_31 = arith.constant 1.000000e-07 : f32
      %68 = vector.broadcast %cst_31 : f32 to vector<21x256xf32>
      %69 = arith.addf %67, %68 : vector<21x256xf32>
      %70 = math.log %69 : vector<21x256xf32>
      %71 = arith.subf %61, %70 : vector<21x256xf32>
      %72 = arith.mulf %60, %71 : vector<21x256xf32>
      %cst_32 = arith.constant dense<0.000000e+00> : vector<256xf32>
      %73 = vector.multi_reduction <add>, %72, %cst_32 [0] : vector<21x256xf32> to vector<256xf32>
      %74 = vector.shape_cast %73 : vector<256xf32> to vector<1x256xf32>
      %75 = arith.mulf %69, %71 : vector<21x256xf32>
      %cst_33 = arith.constant dense<0.000000e+00> : vector<256xf32>
      %76 = vector.multi_reduction <add>, %75, %cst_33 [0] : vector<21x256xf32> to vector<256xf32>
      %77 = vector.shape_cast %76 : vector<256xf32> to vector<1x256xf32>
      %cst_34 = arith.constant 0.000000e+00 : f32
      %78 = vector.broadcast %cst_34 : f32 to vector<1x256xf32>
      %79 = arith.subf %78, %77 : vector<1x256xf32>
      %c0_35 = arith.constant 0 : index
      %c0_36 = arith.constant 0 : index
      %80 = vector.load %arg11[%c0_35, %c0_36] : memref<1x256xf32, #tpu.memory_space<vmem>>, vector<1x256xf32>
      %81 = arith.select %36, %74, %62 : vector<1x256xi1>, vector<1x256xf32>
      %82 = arith.addf %80, %81 : vector<1x256xf32>
      %c0_37 = arith.constant 0 : index
      %c0_38 = arith.constant 0 : index
      %83 = vector.load %arg11[%c0_37, %c0_38] : memref<1x256xf32, #tpu.memory_space<vmem>>, vector<1x256xf32>
      tpu.vector_store %arg11[%c0_37, %c0_38], %82 {strides = array<i32>} : memref<1x256xf32, #tpu.memory_space<vmem>>, vector<1x256xf32>,
      %c0_39 = arith.constant 0 : index
      %c0_40 = arith.constant 0 : index
      %84 = vector.load %arg12[%c0_39, %c0_40] : memref<1x256xf32, #tpu.memory_space<vmem>>, vector<1x256xf32>
      %85 = arith.select %36, %79, %62 : vector<1x256xi1>, vector<1x256xf32>
      %86 = arith.addf %84, %85 : vector<1x256xf32>
      %c0_41 = arith.constant 0 : index
      %c0_42 = arith.constant 0 : index
      %87 = vector.load %arg12[%c0_41, %c0_42] : memref<1x256xf32, #tpu.memory_space<vmem>>, vector<1x256xf32>
      tpu.vector_store %arg12[%c0_41, %c0_42], %86 {strides = array<i32>} : memref<1x256xf32, #tpu.memory_space<vmem>>, vector<1x256xf32>,
      %cst_43 = arith.constant 1.000000e-07 : f32
      %88 = vector.broadcast %cst_43 : f32 to vector<21x256xf32>
      %89 = arith.addf %22, %88 : vector<21x256xf32>
      %90 = math.log %89 : vector<21x256xf32>
      %91 = arith.subf %90, %61 : vector<21x256xf32>
      %92 = arith.mulf %89, %91 : vector<21x256xf32>
      %cst_44 = arith.constant dense<0.000000e+00> : vector<256xf32>
      %93 = vector.multi_reduction <add>, %92, %cst_44 [0] : vector<21x256xf32> to vector<256xf32>
      %94 = vector.shape_cast %93 : vector<256xf32> to vector<1x256xf32>
      %c0_45 = arith.constant 0 : index
      %c0_46 = arith.constant 0 : index
      %95 = vector.load %arg14[%c0_45, %c0_46] : memref<1x256xf32, #tpu.memory_space<vmem>>, vector<1x256xf32>
      %96 = arith.select %38, %94, %62 : vector<1x256xi1>, vector<1x256xf32>
      %97 = arith.addf %95, %96 : vector<1x256xf32>
      %c0_47 = arith.constant 0 : index
      %c0_48 = arith.constant 0 : index
      %98 = vector.load %arg14[%c0_47, %c0_48] : memref<1x256xf32, #tpu.memory_space<vmem>>, vector<1x256xf32>
      tpu.vector_store %arg14[%c0_47, %c0_48], %97 {strides = array<i32>} : memref<1x256xf32, #tpu.memory_space<vmem>>, vector<1x256xf32>,
      %cst_49 = arith.constant 1.000000e-07 : f32
      %99 = vector.broadcast %cst_49 : f32 to vector<21x256xf32>
      %100 = arith.addf %25, %99 : vector<21x256xf32>
      %101 = math.log %100 : vector<21x256xf32>
      %102 = arith.subf %101, %61 : vector<21x256xf32>
      %103 = arith.mulf %100, %102 : vector<21x256xf32>
      %cst_50 = arith.constant dense<0.000000e+00> : vector<256xf32>
      %104 = vector.multi_reduction <add>, %103, %cst_50 [0] : vector<21x256xf32> to vector<256xf32>
      %105 = vector.shape_cast %104 : vector<256xf32> to vector<1x256xf32>
      %c0_51 = arith.constant 0 : index
      %c0_52 = arith.constant 0 : index
      %106 = vector.load %arg17[%c0_51, %c0_52] : memref<1x256xf32, #tpu.memory_space<vmem>>, vector<1x256xf32>
      %107 = arith.select %40, %105, %62 : vector<1x256xi1>, vector<1x256xf32>
      %108 = arith.addf %106, %107 : vector<1x256xf32>
      %c0_53 = arith.constant 0 : index
      %c0_54 = arith.constant 0 : index
      %109 = vector.load %arg17[%c0_53, %c0_54] : memref<1x256xf32, #tpu.memory_space<vmem>>, vector<1x256xf32>
      tpu.vector_store %arg17[%c0_53, %c0_54], %108 {strides = array<i32>} : memref<1x256xf32, #tpu.memory_space<vmem>>, vector<1x256xf32>,
      %c0_55 = arith.constant 0 : index
      %c0_56 = arith.constant 0 : index
      %110 = arith.index_cast %14 : i32 to index
      %111 = vector.load %arg6[%c0_55, %c0_56, %110] : memref<1x4x512xf32, #tpu.memory_space<vmem>>, vector<1x4x256xf32>
      %112 = vector.shape_cast %111 : vector<1x4x256xf32> to vector<4x256xf32>
      %c0_57 = arith.constant 0 : index
      %c0_58 = arith.constant 0 : index
      %113 = arith.index_cast %14 : i32 to index
      %114 = vector.load %arg8[%c0_57, %c0_58, %113] : memref<1x4x512xf32, #tpu.memory_space<vmem>>, vector<1x4x256xf32>
      %115 = vector.shape_cast %114 : vector<1x4x256xf32> to vector<4x256xf32>
      %116 = arith.subf %115, %112 : vector<4x256xf32>
      %117 = arith.mulf %116, %116 : vector<4x256xf32>
      %cst_59 = arith.constant dense<0.000000e+00> : vector<256xf32>
      %118 = vector.multi_reduction <add>, %117, %cst_59 [0] : vector<4x256xf32> to vector<256xf32>
      %119 = vector.shape_cast %118 : vector<256xf32> to vector<1x256xf32>
      %c0_60 = arith.constant 0 : index
      %c0_61 = arith.constant 0 : index
      %120 = vector.load %arg15[%c0_60, %c0_61] : memref<1x256xf32, #tpu.memory_space<vmem>>, vector<1x256xf32>
      %121 = arith.select %38, %119, %62 : vector<1x256xi1>, vector<1x256xf32>
      %122 = arith.addf %120, %121 : vector<1x256xf32>
      %c0_62 = arith.constant 0 : index
      %c0_63 = arith.constant 0 : index
      %123 = vector.load %arg15[%c0_62, %c0_63] : memref<1x256xf32, #tpu.memory_space<vmem>>, vector<1x256xf32>
      tpu.vector_store %arg15[%c0_62, %c0_63], %122 {strides = array<i32>} : memref<1x256xf32, #tpu.memory_space<vmem>>, vector<1x256xf32>,
      %c0_64 = arith.constant 0 : index
      %c0_65 = arith.constant 0 : index
      %124 = arith.index_cast %14 : i32 to index
      %125 = vector.load %arg7[%c0_64, %c0_65, %124] : memref<1x4x512xf32, #tpu.memory_space<vmem>>, vector<1x4x256xf32>
      %126 = vector.shape_cast %125 : vector<1x4x256xf32> to vector<4x256xf32>
      %127 = arith.subf %115, %126 : vector<4x256xf32>
      %128 = arith.mulf %127, %127 : vector<4x256xf32>
      %cst_66 = arith.constant dense<0.000000e+00> : vector<256xf32>
      %129 = vector.multi_reduction <add>, %128, %cst_66 [0] : vector<4x256xf32> to vector<256xf32>
      %130 = vector.shape_cast %129 : vector<256xf32> to vector<1x256xf32>
      %c0_67 = arith.constant 0 : index
      %c0_68 = arith.constant 0 : index
      %131 = vector.load %arg18[%c0_67, %c0_68] : memref<1x256xf32, #tpu.memory_space<vmem>>, vector<1x256xf32>
      %132 = arith.select %40, %130, %62 : vector<1x256xi1>, vector<1x256xf32>
      %133 = arith.addf %131, %132 : vector<1x256xf32>
      %c0_69 = arith.constant 0 : index
      %c0_70 = arith.constant 0 : index
      %134 = vector.load %arg18[%c0_69, %c0_70] : memref<1x256xf32, #tpu.memory_space<vmem>>, vector<1x256xf32>
      tpu.vector_store %arg18[%c0_69, %c0_70], %133 {strides = array<i32>} : memref<1x256xf32, #tpu.memory_space<vmem>>, vector<1x256xf32>,
    }
    %c2_i32_2 = arith.constant 2 : i32
    %c0_i32_3 = arith.constant 0 : i32
    %8 = arith.cmpi eq, %arg1, %c0_i32_3 : i32
    %9 = arith.extui %8 : i1 to i32
    %c0_i32_4 = arith.constant 0 : i32
    %10 = arith.cmpi ne, %9, %c0_i32_4 : i32
    scf.if %10 {
      %c0_5 = arith.constant 0 : index
      %c0_6 = arith.constant 0 : index
      %11 = vector.load %arg10[%c0_5, %c0_6] : memref<1x256xf32, #tpu.memory_space<vmem>>, vector<1x256xf32>
      %cst_7 = arith.constant dense<0.000000e+00> : vector<1xf32>
      %12 = vector.multi_reduction <add>, %11, %cst_7 [1] : vector<1x256xf32> to vector<1xf32>
      %13 = vector.shape_cast %12 : vector<1xf32> to vector<1x1xf32>
      %14 = vector.shape_cast %13 : vector<1x1xf32> to vector<1x1xf32>
      %15 = vector.broadcast %14 : vector<1x1xf32> to vector<1x128xf32>
      %c0_8 = arith.constant 0 : index
      %c0_9 = arith.constant 0 : index
      %16 = vector.load %arg11[%c0_8, %c0_9] : memref<1x256xf32, #tpu.memory_space<vmem>>, vector<1x256xf32>
      %cst_10 = arith.constant dense<0.000000e+00> : vector<1xf32>
      %17 = vector.multi_reduction <add>, %16, %cst_10 [1] : vector<1x256xf32> to vector<1xf32>
      %18 = vector.shape_cast %17 : vector<1xf32> to vector<1x1xf32>
      %19 = vector.shape_cast %18 : vector<1x1xf32> to vector<1x1xf32>
      %20 = vector.broadcast %19 : vector<1x1xf32> to vector<1x128xf32>
      %c0_11 = arith.constant 0 : index
      %c0_12 = arith.constant 0 : index
      %21 = vector.load %arg12[%c0_11, %c0_12] : memref<1x256xf32, #tpu.memory_space<vmem>>, vector<1x256xf32>
      %cst_13 = arith.constant dense<0.000000e+00> : vector<1xf32>
      %22 = vector.multi_reduction <add>, %21, %cst_13 [1] : vector<1x256xf32> to vector<1xf32>
      %23 = vector.shape_cast %22 : vector<1xf32> to vector<1x1xf32>
      %24 = vector.shape_cast %23 : vector<1x1xf32> to vector<1x1xf32>
      %25 = vector.broadcast %24 : vector<1x1xf32> to vector<1x128xf32>
      %c0_14 = arith.constant 0 : index
      %c0_15 = arith.constant 0 : index
      %26 = vector.load %arg13[%c0_14, %c0_15] : memref<1x256xf32, #tpu.memory_space<vmem>>, vector<1x256xf32>
      %cst_16 = arith.constant dense<0.000000e+00> : vector<1xf32>
      %27 = vector.multi_reduction <add>, %26, %cst_16 [1] : vector<1x256xf32> to vector<1xf32>
      %28 = vector.shape_cast %27 : vector<1xf32> to vector<1x1xf32>
      %29 = vector.shape_cast %28 : vector<1x1xf32> to vector<1x1xf32>
      %30 = vector.broadcast %29 : vector<1x1xf32> to vector<1x128xf32>
      %c0_17 = arith.constant 0 : index
      %c0_18 = arith.constant 0 : index
      %31 = vector.load %arg14[%c0_17, %c0_18] : memref<1x256xf32, #tpu.memory_space<vmem>>, vector<1x256xf32>
      %cst_19 = arith.constant dense<0.000000e+00> : vector<1xf32>
      %32 = vector.multi_reduction <add>, %31, %cst_19 [1] : vector<1x256xf32> to vector<1xf32>
      %33 = vector.shape_cast %32 : vector<1xf32> to vector<1x1xf32>
      %34 = vector.shape_cast %33 : vector<1x1xf32> to vector<1x1xf32>
      %35 = vector.broadcast %34 : vector<1x1xf32> to vector<1x128xf32>
      %c0_20 = arith.constant 0 : index
      %c0_21 = arith.constant 0 : index
      %36 = vector.load %arg15[%c0_20, %c0_21] : memref<1x256xf32, #tpu.memory_space<vmem>>, vector<1x256xf32>
      %cst_22 = arith.constant dense<0.000000e+00> : vector<1xf32>
      %37 = vector.multi_reduction <add>, %36, %cst_22 [1] : vector<1x256xf32> to vector<1xf32>
      %38 = vector.shape_cast %37 : vector<1xf32> to vector<1x1xf32>
      %39 = vector.shape_cast %38 : vector<1x1xf32> to vector<1x1xf32>
      %40 = vector.broadcast %39 : vector<1x1xf32> to vector<1x128xf32>
      %c0_23 = arith.constant 0 : index
      %c0_24 = arith.constant 0 : index
      %41 = vector.load %arg16[%c0_23, %c0_24] : memref<1x256xf32, #tpu.memory_space<vmem>>, vector<1x256xf32>
      %cst_25 = arith.constant dense<0.000000e+00> : vector<1xf32>
      %42 = vector.multi_reduction <add>, %41, %cst_25 [1] : vector<1x256xf32> to vector<1xf32>
      %43 = vector.shape_cast %42 : vector<1xf32> to vector<1x1xf32>
      %44 = vector.shape_cast %43 : vector<1x1xf32> to vector<1x1xf32>
      %45 = vector.broadcast %44 : vector<1x1xf32> to vector<1x128xf32>
      %c0_26 = arith.constant 0 : index
      %c0_27 = arith.constant 0 : index
      %46 = vector.load %arg17[%c0_26, %c0_27] : memref<1x256xf32, #tpu.memory_space<vmem>>, vector<1x256xf32>
      %cst_28 = arith.constant dense<0.000000e+00> : vector<1xf32>
      %47 = vector.multi_reduction <add>, %46, %cst_28 [1] : vector<1x256xf32> to vector<1xf32>
      %48 = vector.shape_cast %47 : vector<1xf32> to vector<1x1xf32>
      %49 = vector.shape_cast %48 : vector<1x1xf32> to vector<1x1xf32>
      %50 = vector.broadcast %49 : vector<1x1xf32> to vector<1x128xf32>
      %c0_29 = arith.constant 0 : index
      %c0_30 = arith.constant 0 : index
      %51 = vector.load %arg18[%c0_29, %c0_30] : memref<1x256xf32, #tpu.memory_space<vmem>>, vector<1x256xf32>
      %cst_31 = arith.constant dense<0.000000e+00> : vector<1xf32>
      %52 = vector.multi_reduction <add>, %51, %cst_31 [1] : vector<1x256xf32> to vector<1xf32>
      %53 = vector.shape_cast %52 : vector<1xf32> to vector<1x1xf32>
      %54 = vector.shape_cast %53 : vector<1x1xf32> to vector<1x1xf32>
      %55 = vector.broadcast %54 : vector<1x1xf32> to vector<1x128xf32>
      %56 = tpu.concatenate %15, %20, %25, %30, %35, %40, %45, %50, %55 in 0 : vector<1x128xf32>, vector<1x128xf32>, vector<1x128xf32>, vector<1x128xf32>, vector<1x128xf32>, vector<1x128xf32>, vector<1x128xf32>, vector<1x128xf32>, vector<1x128xf32> -> vector<9x128xf32>
      %c0_32 = arith.constant 0 : index
      %c0_33 = arith.constant 0 : index
      %c0_34 = arith.constant 0 : index
      %57 = vector.load %arg9[%c0_32, %c0_33, %c0_34] : memref<1x9x128xf32, #tpu.memory_space<vmem>>, vector<1x9x128xf32>
      %58 = vector.shape_cast %57 : vector<1x9x128xf32> to vector<9x128xf32>
      %59 = vector.shape_cast %56 : vector<9x128xf32> to vector<1x9x128xf32>
      tpu.vector_store %arg9[%c0_32, %c0_33, %c0_34], %59 {strides = array<i32>} : memref<1x9x128xf32, #tpu.memory_space<vmem>>, vector<1x9x128xf32>,
    } else {
    }
    return
  }
  func.func @transform_0(%arg0: i32, %arg1: i32) -> i32 {
    %c0_i32 = arith.constant 0 : i32
    %c0_i32_0 = arith.constant 0 : i32
    return %c0_i32 : i32
  }
  func.func @transform_1(%arg0: i32, %arg1: i32) -> (i32, i32, i32) {
    %c0_i32 = arith.constant 0 : i32
    %c0_i32_0 = arith.constant 0 : i32
    return %arg0, %c0_i32, %arg1 : i32, i32, i32
  }
  func.func @transform_2(%arg0: i32, %arg1: i32) -> (i32, i32, i32) {
    %c2_i32 = arith.constant 2 : i32
    %0 = arith.addi %arg0, %c2_i32 : i32
    %c4_i32 = arith.constant 4 : i32
    %c0_i32 = arith.constant 0 : i32
    %1 = arith.cmpi eq, %c4_i32, %c0_i32 : i32
    %c1_i32 = arith.constant 1 : i32
    %2 = arith.select %1, %c1_i32, %c4_i32 : i32
    %3 = arith.remsi %0, %2 : i32
    %c0_i32_0 = arith.constant 0 : i32
    %4 = arith.cmpi ne, %3, %c0_i32_0 : i32
    %c0_i32_1 = arith.constant 0 : i32
    %5 = arith.cmpi slt, %3, %c0_i32_1 : i32
    %c0_i32_2 = arith.constant 0 : i32
    %6 = arith.cmpi slt, %2, %c0_i32_2 : i32
    %7 = arith.xori %5, %6 : i1
    %8 = arith.andi %7, %4 : i1
    %9 = arith.addi %3, %2 : i32
    %10 = arith.select %8, %9, %3 : i32
    %c0_i32_3 = arith.constant 0 : i32
    %c0_i32_4 = arith.constant 0 : i32
    return %10, %c0_i32_3, %arg1 : i32, i32, i32
  }
  func.func @transform_3(%arg0: i32, %arg1: i32) -> (i32, i32, i32) {
    %c0_i32 = arith.constant 0 : i32
    %c0_i32_0 = arith.constant 0 : i32
    return %arg0, %c0_i32, %arg1 : i32, i32, i32
  }
  func.func @transform_4(%arg0: i32, %arg1: i32) -> (i32, i32, i32) {
    %c0_i32 = arith.constant 0 : i32
    %c0_i32_0 = arith.constant 0 : i32
    return %arg0, %c0_i32, %arg1 : i32, i32, i32
  }
  func.func @transform_5(%arg0: i32, %arg1: i32) -> (i32, i32, i32) {
    %c2_i32 = arith.constant 2 : i32
    %0 = arith.addi %arg0, %c2_i32 : i32
    %c4_i32 = arith.constant 4 : i32
    %c0_i32 = arith.constant 0 : i32
    %1 = arith.cmpi eq, %c4_i32, %c0_i32 : i32
    %c1_i32 = arith.constant 1 : i32
    %2 = arith.select %1, %c1_i32, %c4_i32 : i32
    %3 = arith.remsi %0, %2 : i32
    %c0_i32_0 = arith.constant 0 : i32
    %4 = arith.cmpi ne, %3, %c0_i32_0 : i32
    %c0_i32_1 = arith.constant 0 : i32
    %5 = arith.cmpi slt, %3, %c0_i32_1 : i32
    %c0_i32_2 = arith.constant 0 : i32
    %6 = arith.cmpi slt, %2, %c0_i32_2 : i32
    %7 = arith.xori %5, %6 : i1
    %8 = arith.andi %7, %4 : i1
    %9 = arith.addi %3, %2 : i32
    %10 = arith.select %8, %9, %3 : i32
    %c0_i32_3 = arith.constant 0 : i32
    %c0_i32_4 = arith.constant 0 : i32
    return %10, %c0_i32_3, %arg1 : i32, i32, i32
  }
  func.func @transform_6(%arg0: i32, %arg1: i32) -> (i32, i32, i32) {
    %c0_i32 = arith.constant 0 : i32
    %c0_i32_0 = arith.constant 0 : i32
    return %arg0, %c0_i32, %arg1 : i32, i32, i32
  }
  func.func @transform_7(%arg0: i32, %arg1: i32) -> (i32, i32, i32) {
    %c0_i32 = arith.constant 0 : i32
    %c0_i32_0 = arith.constant 0 : i32
    %c0_i32_1 = arith.constant 0 : i32
    return %arg0, %c0_i32, %c0_i32_0 : i32, i32, i32
  }
}

</mosaic_0001>

<bundles_post_ra>
// kernel: isd_loss.1
= control target key start
LH: loop header
LB: loop body
LE: loop exit
PB: predicated region body
PF: predicated region fallthrough
CT: control target
= control target key end

     0   :  { %s4400_s0 = inlined_call_operand.<no memory space> [shape: f32[1], index: 0, kind: input, shape index: {}]   ;;  %s4401_s1 = inlined_call_operand.vmem [shape: f32[4,21,384], index: 1, kind: input, shape index: {}]   ;;  %s4402_s2 = inlined_call_operand.vmem [shape: f32[4,21,384], index: 2, kind: input, shape index: {}]   ;;  %s4403_s3 = inlined_call_operand.vmem [shape: f32[4,21,384], index: 3, kind: input, shape index: {}]   ;;  %s4404_s4 = inlined_call_operand.vmem [shape: f32[4,4,384], index: 4, kind: input, shape index: {}]   ;;  %s4405_s5 = inlined_call_operand.vmem [shape: f32[4,4,384], index: 5, kind: input, shape index: {}]   ;;  %s4406_s6 = inlined_call_operand.vmem [shape: f32[4,4,384], index: 6, kind: input, shape index: {}]   ;;  %s4407_s7 = inlined_call_operand.vmem [shape: f32[4,9,128], index: 7, kind: output, shape index: {}]  }
   0x1   :  { %4410 = sst [smem:[#allocation17_spill]] %s4401_s1 }
   0x2   :  { %4411 = sst [smem:[#allocation18_spill]] %s4402_s2 }
   0x3   :  { %4412 = sst [smem:[#allocation19_spill]] %s4403_s3 }
   0x4   :  { %12 = sst [smem:[#allocation11]] %s4400_s0 }
   0x5   :  { %s3716_s26 = smov 0   ;;  %s3718_s27 = smov 0  }
   0x6   :  { %s3720_s28 = smov 0   ;;  %s3722_s29 = smov 0  }
   0x7   :  { %s3724_s30 = smov 0   ;;  %s3726_s8 = smov 0  }
   0x8   :  { %s3728_s9 = smov 0  }
   0x9 LB: > { %s30_s0 = sadd.s32 1, %s3611_s8  ;;  %s60_s10 = sadd.s32 1, %s3603_s29  ;;  %s3615_s9 = sphi %s3728_s9, %s18_s9   ;;  %s3611_s8 = sphi %s3726_s8, %s4454_s8   ;;  %s3607_s30 = sphi %s3724_s30, %s4453_s30   ;;  %s3603_s29 = sphi %s3722_s29, %s4452_s29   ;;  %s3599_s28 = sphi %s3720_s28, %s4451_s28   ;;  %s3595_s27 = sphi %s3718_s27, %s4450_s27   ;;  %s3591_s26 = sphi %s3716_s26, %s4449_s26  }
   0xa   : > { %p32_p0 = scmp.ge.s32.totalorder %s30_s0, 4  ;;  %p67_p1 = scmp.ne.s32.totalorder %s3603_s29, %s3599_s28 }
   0xb   : > { %p68_p2 = scmp.eq.s32.totalorder %s3615_s9, 0  ;;  %s83_s11 = sadd.s32 2, %s3611_s8 }
   0xc   : > { %s4456_s0 = smov (%p32_p0, %s30_s0), 0  ;;  %s85_s14 = ssub.s32 0, %s83_s11 }
   0xd   : > { %p3761_p3 = por %p68_p2, %p67_p1  ;;  %s55_s13 = ssub.s32 %s3611_s8, %s4456_s0 }
   0xe   : > { %p58_p4 = scmp.eq.s32.totalorder %s55_s13, 0  ;;  %s3221_s15 = smin.u32 %s85_s14, %s83_s11 }
   0xf   : > { %s87_s16 = sand.u32 3, %s3221_s15   ;;  %s96_s17 = sadd.s32 2, %s4456_s0 }
  0x10   : > { %s3769_s18 = scalar_select %p58_p4, %s3603_s29, %s60_s10  }
  0x11   : > { %s98_s19 = ssub.s32 0, %s96_s17  ;;  %p121_p5 = scmp.ne.s32.totalorder %s3595_s27, %s3591_s26 }
  0x12   : > { %s3224_s20 = smin.u32 %s98_s19, %s96_s17  ;;  %p3223_p6 = scmp.lt.s32.totalorder %s87_s16, 0 }
  0x13   : > { %s94_s21 = sadd.s32 4, %s87_s16  ;;  %s100_s22 = sand.u32 3, %s3224_s20  }
  0x14   : > { %p3775_p7 = por %p121_p5, %p68_p2  ;;  %s4458_s21 = smov (!%p3223_p6, %s94_s21), %s87_s16 }
  0x15   : > { %p3226_p8 = scmp.lt.s32.totalorder %s100_s22, 0  ;;  %s107_s24 = sadd.s32 4, %s100_s22 }
  0x16   : > { %s114_s10 = sadd.s32 1, %s3595_s27  ;;  %p3234_p10 = scmp.ge.s32.totalorder %s3615_s9, 4 }
  0x17   : > { %s4460_s24 = smov (!%p3226_p8, %s107_s24), %s100_s22 }
  0x18   : > { %s109_s25 = ssub.s32 %s4458_s21, %s4460_s24  ;;  %314 = sbr.rel (%p3234_p10) target bundleno = 88 (0x58), region = 20 }
  0x19   : > { %p112_p9 = scmp.eq.s32.totalorder %s109_s25, 0 }
  0x1b   : > { %s3784_s11 = scalar_select %p112_p9, %s3595_s27, %s114_s10  }
  0x1f   : > { %317 = sbr.rel (!%p3761_p3) target bundleno = 50 (0x32), region = 24  ;;  %s319_s13 = sand.u32 (%p3761_p3), 1, %s3603_s29  }
  0x20   : > { %s3288_s14 = smul.u32 (%p3761_p3), 72, %s3611_s8  ;;  %s4415_s1 = sld [smem:[#allocation17_spill]] (%p3761_p3) }
  0x21   : > { %s3791_s15 = smul.u32 (%p3761_p3), 96, %s319_s13  ;;  %s3625_s25 = smov (%p3761_p3), 0  }
  0x22   : > { %s3629_s10 = smov (%p3761_p3), 0  }
  0x23   : > { %s321_s20 = scalar_lea.vmem (%p3761_p3), [#allocation12], %s3791_s15  }
  0x24   : > { %s4416_s22 = smov (%p3761_p3), %s321_s20 }
  0x26   : > { %s3796_s19 = scalar_lea.vmem %s4415_s1, %s3288_s14  }
  0x27   : > { %s3621_s24 = smov %s3796_s19  }
  0x28 LB: >> { %v546_v0 = vld [vmem:[%s3623_s24] sm:$0xff]  ;;  %v548_v1 = vld [vmem:[%s3623_s24 + $0x18] sm:$0xff]  ;;  %v550_v2 = vld [vmem:[%s3623_s24 + $0x30] sm:$0xff]  ;;  %s552_s13 = sadd.s32 1, %s3627_s25  ;;  %s540_s10 = sadd.s32 1, %s3631_s10   ;;  %s3631_s10 = sphi %s3629_s10, %s540_s10   ;;  %s3627_s25 = sphi %s3625_s25, %s3626_s25   ;;  %s3623_s24 = sphi %s3621_s24, %s557_s24   ;;  %s3619_s22 = sphi %s4416_s22, %s558_s22  }
  0x29   : >> { %547 = vst [vmem:[%s3619_s22] sm:$0xff] %v546_v0  ;;  %549 = vst [vmem:[%s3619_s22 + $0x20] sm:$0xff] %v548_v1  ;;  %p553_p11 = scmp.ge.s32.totalorder %s552_s13, 3  ;;  %p539_p12 = scmp.ge.s32.totalorder %s540_s10, 3 }
  0x2a   : >> { %551 = vst [vmem:[%s3619_s22 + $0x40] sm:$0xff] %v550_v2 }
  0x2b   : >> { %s4462_s13 = smov (%p553_p11, %s552_s13), 0  ;;  %542 = sbr.rel (!%p539_p12) target bundleno = 40 (0x28), region = 392 }
  0x2c   : >> { %s3236_s14 = sshll.u32 %s4462_s13, 3  ;;  %s3626_s25 = smov %s4462_s13  }
  0x2d   : >> { %s557_s24 = scalar_lea.vmem %s3796_s19, %s3236_s14   ;;  %s558_s22 = scalar_lea.vmem %s321_s20, %s3236_s14 [#allocation12]  }
  0x32 PF: > { %783 = sbr.rel (!%p3775_p7) target bundleno = 69 (0x45), region = 90  ;;  %s785_s15 = sand.u32 (%p3775_p7), 1, %s3595_s27  }
  0x33   : > { %s3290_s16 = smul.u32 (%p3775_p7), 72, %s4458_s21  ;;  %s4417_s2 = sld [smem:[#allocation18_spill]] (%p3775_p7) }
  0x34   : > { %s3810_s17 = smul.u32 (%p3775_p7), 96, %s785_s15  ;;  %s3641_s20 = smov (%p3775_p7), 0  }
  0x35   : > { %s3645_s23 = smov (%p3775_p7), 0  }
  0x36   : > { %s787_s22 = scalar_lea.vmem (%p3775_p7), [#allocation13], %s3810_s17  }
  0x37   : > { %s4418_s24 = smov (%p3775_p7), %s787_s22 }
  0x39   : > { %s3815_s1 = scalar_lea.vmem %s4417_s2, %s3290_s16  }
  0x3a   : > { %s3637_s19 = smov %s3815_s1  }
  0x3b LB: >> { %v1025_v3 = vld [vmem:[%s3639_s19] sm:$0xff]  ;;  %v1027_v4 = vld [vmem:[%s3639_s19 + $0x18] sm:$0xff]  ;;  %v1029_v5 = vld [vmem:[%s3639_s19 + $0x30] sm:$0xff]  ;;  %s1031_s21 = sadd.s32 1, %s3643_s20  ;;  %s1019_s23 = sadd.s32 1, %s3647_s23   ;;  %s3647_s23 = sphi %s3645_s23, %s1019_s23   ;;  %s3643_s20 = sphi %s3641_s20, %s3642_s20   ;;  %s3639_s19 = sphi %s3637_s19, %s1036_s19   ;;  %s3635_s24 = sphi %s4418_s24, %s1037_s24  }
  0x3c   : >> { %1026 = vst [vmem:[%s3635_s24] sm:$0xff] %v1025_v3  ;;  %1028 = vst [vmem:[%s3635_s24 + $0x20] sm:$0xff] %v1027_v4  ;;  %p1032_p13 = scmp.ge.s32.totalorder %s1031_s21, 3  ;;  %p1018_p0 = scmp.ge.s32.totalorder %s1019_s23, 3 }
  0x3d   : >> { %1030 = vst [vmem:[%s3635_s24 + $0x40] sm:$0xff] %v1029_v5 }
  0x3e   : >> { %s4464_s21 = smov (%p1032_p13, %s1031_s21), 0  ;;  %1021 = sbr.rel (!%p1018_p0) target bundleno = 59 (0x3b), region = 436 }
  0x3f   : >> { %s3247_s10 = sshll.u32 %s4464_s21, 3  ;;  %s3642_s20 = smov %s4464_s21  }
  0x40   : >> { %s1036_s19 = scalar_lea.vmem %s3815_s1, %s3247_s10   ;;  %s1037_s24 = scalar_lea.vmem %s787_s22, %s3247_s10 [#allocation13]  }
  0x45 PF: > { %1262 = sbr.rel (!%p3761_p3) target bundleno = 88 (0x58), region = 156  ;;  %s1264_s13 = sand.u32 (%p3761_p3), 1, %s3603_s29  }
  0x46   : > { %s3292_s15 = smul.u32 (%p3761_p3), 72, %s3611_s8  ;;  %s4419_s3 = sld [smem:[#allocation19_spill]] (%p3761_p3) }
  0x47   : > { %s3829_s16 = smul.u32 (%p3761_p3), 96, %s1264_s13  ;;  %s3657_s1 = smov (%p3761_p3), 0  }
  0x48   : > { %s3661_s22 = smov (%p3761_p3), 0  }
  0x49   : > { %s1266_s24 = scalar_lea.vmem (%p3761_p3), [#allocation14], %s3829_s16  }
  0x4a   : > { %s3649_s19 = smov (%p3761_p3), %s1266_s24  }
  0x4c   : > { %s3834_s14 = scalar_lea.vmem %s4419_s3, %s3292_s15  }
  0x4d   : > { %s3653_s20 = smov %s3834_s14  }
  0x4e LB: >> { %v1491_v6 = vld [vmem:[%s3655_s20] sm:$0xff]  ;;  %v1493_v7 = vld [vmem:[%s3655_s20 + $0x18] sm:$0xff]  ;;  %v1495_v8 = vld [vmem:[%s3655_s20 + $0x30] sm:$0xff]  ;;  %s1497_s12 = sadd.s32 1, %s3659_s1  ;;  %s1485_s22 = sadd.s32 1, %s3663_s22   ;;  %s3663_s22 = sphi %s3661_s22, %s1485_s22   ;;  %s3659_s1 = sphi %s3657_s1, %s3658_s1   ;;  %s3655_s20 = sphi %s3653_s20, %s1502_s20   ;;  %s3651_s19 = sphi %s3649_s19, %s1503_s19  }
  0x4f   : >> { %1492 = vst [vmem:[%s3651_s19] sm:$0xff] %v1491_v6  ;;  %1494 = vst [vmem:[%s3651_s19 + $0x20] sm:$0xff] %v1493_v7  ;;  %p1498_p1 = scmp.ge.s32.totalorder %s1497_s12, 3  ;;  %p1484_p2 = scmp.ge.s32.totalorder %s1485_s22, 3 }
  0x50   : >> { %1496 = vst [vmem:[%s3651_s19 + $0x40] sm:$0xff] %v1495_v8 }
  0x51   : >> { %s4466_s12 = smov (%p1498_p1, %s1497_s12), 0  ;;  %1487 = sbr.rel (!%p1484_p2) target bundleno = 78 (0x4e), region = 480 }
  0x52   : >> { %s3255_s23 = sshll.u32 %s4466_s12, 3  ;;  %s3658_s1 = smov %s4466_s12  }
  0x53   : >> { %s1502_s20 = scalar_lea.vmem %s3834_s14, %s3255_s23   ;;  %s1503_s19 = scalar_lea.vmem %s1266_s24, %s3255_s23 [#allocation14]  }
  0x58 PF: > { %p3262_p3 = scmp.ge.s32.totalorder %s3615_s9, 1  ;;  %p1804_p4 = scmp.lt.s32.totalorder %s3615_s9, 5 }
  0x5a   : > { %p1805_p5 = pnand %p3262_p3, %p1804_p4 }
  0x5c   : > { %1808 = sbr.rel (%p1805_p5) target bundleno = 381 (0x17d), region = 234 }
  0x63   : > { %s1811_s21 = sand.u32 1, %s3599_s28   ;;  %s1818_s10 = sand.u32 1, %s3591_s26   ;;  %v4408_v9 = vlaneseq  ;;  %v3669_v12 = vmov 0.0  }
  0x64   : > { %s3843_s13 = smul.u32 96, %s1811_s21  ;;  %p1935_p6 = scmp.lt.s32.totalorder %s3607_s30, 3 }
  0x65   : > { %s3846_s15 = smul.u32 96, %s1818_s10  ;;  %s1946_s16 = sadd.s32 2, %s3607_s30  ;;  %vm3850_vm0 = vcmp.lt.s32.totalorder %v4408_v9, 256  ;;  %v3855_v11 = vand.u32 127, %v4408_v9 }
  0x66   : > { %2013 = vst.msk [vmem:[#allocation2] sm:$0x3] %vm3850_vm0, %v3669_v12  ;;  %2014 = vst.msk [vmem:[#allocation3] sm:$0x3] %vm3850_vm0, %v3669_v12  ;;  %p1947_p7 = scmp.lt.s32.totalorder %s1946_s16, 0  ;;  %s4468_s30 = smov (!%p1935_p6, %s3607_s30), 3 }
  0x67   : > { %4422 = vst [vmem:[#allocation15_spill] sm:$0xff] %v3855_v11  ;;  %2015 = vst.msk [vmem:[#allocation4] sm:$0x3] %vm3850_vm0, %v3669_v12  ;;  %v3876_v13 = vadd.s32 128, %v3855_v11  ;;  %s1948_s26 = ssub.s32 0, %s1946_s16  ;;  %s3881_s28 = sld [smem:[#allocation11]] }
  0x68   : > { %2016 = vst.msk [vmem:[#allocation5] sm:$0x3] %vm3850_vm0, %v3669_v12  ;;  %2017 = vst.msk [vmem:[#allocation6] sm:$0x3] %vm3850_vm0, %v3669_v12  ;;  %s3295_s17 = smul.u32 12, %s4468_s30  ;;  %s3264_s25 = smin.u32 %s1948_s26, %s1946_s16 }
  0x69   : > { %2018 = vst.msk [vmem:[#allocation7] sm:$0x3] %vm3850_vm0, %v3669_v12  ;;  %2019 = vst.msk [vmem:[#allocation8] sm:$0x3] %vm3850_vm0, %v3669_v12  ;;  %s1950_s14 = sand.u32 3, %s3264_s25   ;;  %s3286_s24 = sshll.u32 %s4468_s30, 4 }
  0x6a   : > { %2020 = vst.msk [vmem:[#allocation9] sm:$0x3] %vm3850_vm0, %v3669_v12  ;;  %2021 = vst.msk [vmem:[#allocation10] sm:$0x3] %vm3850_vm0, %v3669_v12  ;;  %s3886_s1 = scalar_lea.vmem %s4404_s4, %s3295_s17  ;;  %s1951_s22 = ssub.s32 0, %s1950_s14 }
  0x6b   : > { %4423 = vst [vmem:[#allocation16_spill] sm:$0xff] %v3876_v13  ;;  %s4470_s22 = smov (!%p1947_p7, %s1951_s22), %s1950_s14  ;;  %s3891_s21 = scalar_lea.vmem %s4406_s6, %s3295_s17 }
  0x6c   : > { %s3896_s16 = scalar_lea.vmem %s4407_s7, %s3286_s24  ;;  %p3266_p8 = scmp.lt.s32.totalorder %s4470_s22, 0 }
  0x6d   : > { %s1957_s30 = sadd.s32 4, %s4470_s22  ;;  %s2023_s26 = ssub.f32 1.0, %s3881_s28 }
  0x6e   : > { %s4472_s30 = smov (!%p3266_p8, %s1957_s30), %s4470_s22  ;;  %s1813_s12 = scalar_lea.vmem [#allocation12], %s3843_s13 }
  0x6f   : > { %p1962_p9 = scmp.lt.s32.totalorder %s4472_s30, 3  ;;  %s1820_s17 = scalar_lea.vmem [#allocation13], %s3846_s15 }
  0x70   : > { %s1827_s23 = scalar_lea.vmem [#allocation14], %s3843_s13  ;;  %s3907_s3 = smov 0  }
  0x71   : > { %s4474_s30 = smov (!%p1962_p9, %s4472_s30), 3 }
  0x72   : > { %s3296_s25 = smul.u32 12, %s4474_s30 }
  0x74   : > { %s3902_s14 = scalar_lea.vmem %s4405_s5, %s3296_s25 }
  0x75 LB: >> { %v3670_v14 = vmov 1966171168   ;;  %s3271_s2 = sshll.u32 %s3667_s3, 8  ;;  %v4424_v9 = vlaneseq  ;;  %v2219_v19 = vstv %s3881_s28  ;;  %vm2059_vm1 = vcmask 1044480   ;;  %v4425_v11 = vld [vmem:[#allocation15_spill] sm:$0xff]  ;;  %v4426_v13 = vld [vmem:[#allocation16_spill] sm:$0xff]  ;;  %s3667_s3 = sphi %s3907_s3, %s2033_s3  }
  0x76   : >> { %v2123_v15 = vunpack.c.l.s4 %v3670_v14  ;;  %s3913_s24 = sshra.s32 %s3271_s2, 7  ;;  %v2036_v18 = vstv %s3271_s2  ;;  %v2226_v23 = vstv %s2023_s26  ;;  %vm2512_vm4 = vcmask 1043456   ;;  %s2033_s3 = sadd.s32 1, %s3667_s3  }
  0x77   : >> { %v3916_v17 = vshrl.u32 %v4424_v9, 7  ;;  %s3919_s22 = sshll.u32 %s3913_s24, 3  ;;  %v3937_v24 = vadd.s32 %v2036_v18, %v4425_v11  ;;  %v3940_v25 = vadd.s32 %v2036_v18, %v4426_v13  ;;  %s4013_s19 = sshll.u32 %s3913_s24, 2  ;;  %vm3672_vm15 = vmmov 1  }
  0x78   : >> { %v2124_v16 = vunpack.c.0.s8 %v2123_v15  ;;  %s2044_s10 = scalar_lea.vmem %s1813_s12, %s3919_s22 [#allocation12]  ;;  %s2052_s30 = scalar_lea.vmem %s1820_s17, %s3919_s22 [#allocation13] }
  0x79   : >> { %v3928_v20 = vld [vmem:[%s2044_s10] sm:$0xff]  ;;  %v3930_v21 = vld [vmem:[%s2044_s10 + $0x8] sm:$0xff]  ;;  %vm2039_vm2 = vcmp.lt.s32.totalorder %v3937_v24, 384  ;;  %vm2040_vm3 = vcmp.lt.s32.totalorder %v3940_v25, 384  ;;  %s3997_s25 = scalar_lea.vmem %s1827_s23, %s3919_s22 [#allocation14]  ;;  %s2502_s20 = scalar_lea.vmem %s3886_s1, %s4013_s19 }
  0x7a   : >> { %v3932_v22 = vld [vmem:[%s2044_s10 + $0x20] sm:$0xff]  ;;  %v3942_v26 = vld [vmem:[%s2044_s10 + $0x28] sm:$0xff]  ;;  %v3949_v29 = vsub.s32 %v2124_v16, %v3916_v17  ;;  %v2220_v30 = vmul.f32 %v2219_v19, %v3928_v20  ;;  %v2221_v36 = vmul.f32 %v2219_v19, %v3930_v21  ;;  %v4007_v18 = vadd.f32 1e-07, %v3928_v20  ;;  %s2505_s2 = scalar_lea.vmem %s3891_s21, %s4013_s19  ;;  %s2551_s24 = scalar_lea.vmem %s3902_s14, %s4013_s19 }
  0x7b   : >> { %v3944_v27 = vld [vmem:[%s2044_s10 + $0x40] sm:$0x1f]  ;;  %v3946_v28 = vld [vmem:[%s2044_s10 + $0x48] sm:$0x1f]  ;;  %v2222_v37 = vmul.f32 %v2219_v19, %v3932_v22  ;;  %v2223_v43 = vmul.f32 %v2219_v19, %v3942_v26  ;;  %p2030_p10 = scmp.ge.s32.totalorder %s2033_s3, 2  }
  0x7c   : >> { %v3952_v31 = vld [vmem:[%s2052_s30] sm:$0xff]  ;;  %v3954_v32 = vld [vmem:[%s2052_s30 + $0x8] sm:$0xff]  ;;  %v2060_v34 = vsel %vm2059_vm1, %v3944_v27, -inf  ;;  %v2069_v35 = vsel %vm2059_vm1, %v3946_v28, -inf  ;;  %v2224_v53 = vmul.f32 %v2219_v19, %v3944_v27  ;;  %v2225_v54 = vmul.f32 %v2219_v19, %v3946_v28 }
  0x7d   : >> { %v3956_v33 = vld [vmem:[%s2052_s30 + $0x20] sm:$0xff]  ;;  %v3964_v38 = vld [vmem:[%s2052_s30 + $0x28] sm:$0xff]  ;;  %v2061_v41 = vmax.f32 %v3928_v20, %v2060_v34  ;;  %v2070_v42 = vmax.f32 %v3930_v21, %v2069_v35  ;;  %v2227_v44 = vmul.f32 %v2226_v23, %v3952_v31  ;;  %v2228_v47 = vmul.f32 %v2226_v23, %v3954_v32 }
  0x7e   : >> { %v3966_v39 = vld [vmem:[%s2052_s30 + $0x40] sm:$0x1f]  ;;  %v3968_v40 = vld [vmem:[%s2052_s30 + $0x48] sm:$0x1f]  ;;  %v2229_v48 = vmul.f32 %v2226_v23, %v3956_v33  ;;  %v2230_v55 = vmul.f32 %v2226_v23, %v3964_v38  ;;  %v4010_v19 = vadd.f32 1e-07, %v3930_v21 }
  0x7f   : >> { %v2082_v45 = vsel %vm2059_vm1, %v3966_v39, -inf  ;;  %v2091_v46 = vsel %vm2059_vm1, %v3968_v40, -inf  ;;  %v2062_v49 = vmax.f32 %v2061_v41, %v3932_v22  ;;  %v2071_v50 = vmax.f32 %v2070_v42, %v3942_v26  ;;  %v2197_v41 = vld [vmem:[%s3997_s25 + $0x20] sm:$0xff] }
  0x80   : >> { %v2083_v51 = vmax.f32 %v3952_v31, %v2082_v45  ;;  %v2092_v52 = vmax.f32 %v3954_v32, %v2091_v46  ;;  %v2233_v56 = vadd.f32 %v2227_v44, %v2220_v30  ;;  %v2231_v61 = vmul.f32 %v2226_v23, %v3966_v39 }
  0x81   : >> { %v2063_v57 = vrot.slane %v2062_v49, 4  ;;  %v2072_v58 = vrot.slane %v2071_v50, 4  ;;  %v2234_v62 = vadd.f32 %v2228_v47, %v2221_v36  ;;  %v2235_v63 = vadd.f32 %v2229_v48, %v2222_v37  ;;  %v2195_v36 = vld [vmem:[%s3997_s25] sm:$0xff]  ;;  %v2196_v37 = vld [vmem:[%s3997_s25 + $0x8] sm:$0xff] }
  0x82   : >> { %v2084_v59 = vmax.f32 %v2083_v51, %v3956_v33  ;;  %v2093_v60 = vmax.f32 %v2092_v52, %v3964_v38  ;;  %v3990_v0 = vadd.f32 1e-07, %v2233_v56  ;;  %v2232_v5 = vmul.f32 %v2226_v23, %v3968_v40 }
  0x83   : >> { %v2064_v1 = vmax.f32 %v2062_v49, %v2063_v57  ;;  %v2073_v2 = vmax.f32 %v2071_v50, %v2072_v58  ;;  %v2236_v6 = vadd.f32 %v2230_v55, %v2223_v43  ;;  %v4000_v7 = vadd.f32 1e-07, %v2234_v62  ;;  %v2198_v49 = vld [vmem:[%s3997_s25 + $0x28] sm:$0xff] }
  0x84   : >> { %v2085_v3 = vrot.slane %v2084_v59, 4  ;;  %v2094_v4 = vrot.slane %v2093_v60, 4  ;;  %3461 = vlog2.f32 %v3990_v0  ;;  %v4003_v16 = vadd.f32 1e-07, %v2235_v63 }
  0x85   : >> { %v2065_v8 = vrot.slane %v2064_v1, 2  ;;  %v2074_v12 = vrot.slane %v2073_v2, 2  ;;  %3463 = vlog2.f32 %v4000_v7  ;;  %v4018_v42 = vadd.f32 1e-07, %v2236_v6 }
  0x86   : >> { %v2086_v14 = vmax.f32 %v2084_v59, %v2085_v3  ;;  %v2095_v15 = vmax.f32 %v2093_v60, %v2094_v4  ;;  %3465 = vlog2.f32 %v4007_v18  ;;  %v4022_v43 = vadd.f32 1e-07, %v3952_v31  ;;  %v2199_v59 = vld [vmem:[%s3997_s25 + $0x40] sm:$0x1f]  ;;  %v2200_v60 = vld [vmem:[%s3997_s25 + $0x48] sm:$0x1f] }
  0x87   : >> { %v2066_v23 = vmax.f32 %v2064_v1, %v2065_v8  ;;  %v2075_v30 = vmax.f32 %v2073_v2, %v2074_v12  ;;  %v4025_v44 = vadd.f32 1e-07, %v3954_v32  ;;  %3467 = vlog2.f32 %v4010_v19  ;;  %v2503_v4 = vld [vmem:[%s2502_s20] sm:$0xff] }
  0x88   : >> { %v2087_v34 = vrot.slane %v2086_v14, 2  ;;  %v2096_v35 = vrot.slane %v2095_v15, 2  ;;  %v4029_v50 = vadd.f32 1e-07, %v2195_v36  ;;  %v4031_v51 = vadd.f32 1e-07, %v2196_v37 }
  0x89   : >> { %v2067_v45 = vrot.slane %v2066_v23, 1  ;;  %v2076_v46 = vrot.slane %v2075_v30, 1  ;;  %v4033_v52 = vadd.f32 1e-07, %v2197_v41  ;;  %3469 = vlog2.f32 %v4022_v43  ;;  %v2552_v12 = vld [vmem:[%s2551_s24] sm:$0xff] }
  0x8a   : >> { %v2088_v47 = vmax.f32 %v2086_v14, %v2087_v34  ;;  %v2097_v48 = vmax.f32 %v2095_v15, %v2096_v35  ;;  %v4040_v62 = vadd.f32 1e-07, %v2198_v49  ;;  %v2237_v63 = vadd.f32 %v2231_v61, %v2224_v53 }
  0x8b   : >> { %v2068_v55 = vmax.f32 %v2066_v23, %v2067_v45  ;;  %v2077_v56 = vmax.f32 %v2075_v30, %v2076_v46  ;;  %v2238_v1 = vadd.f32 %v2232_v5, %v2225_v54  ;;  %3471 = vlog2.f32 %v4025_v44  ;;  %v2506_v5 = vld [vmem:[%s2505_s2] sm:$0xff] }
  0x8c   : >> { %v2089_v57 = vrot.slane %v2088_v47, 1  ;;  %v2098_v58 = vrot.slane %v2097_v48, 1  ;;  %v4055_v53 = vadd.f32 1e-07, %v2199_v59  ;;  %v4057_v54 = vadd.f32 1e-07, %v2200_v60 }
  0x8d   : >> { %vm2078_vm5 = vcmp.gt.f32.partialorder %v2068_v55, %v3928_v20  ;;  %vm2079_vm6 = vcmp.gt.f32.partialorder %v2077_v56, %v3930_v21  ;;  %v4059_v61 = vadd.f32 1e-07, %v2237_v63  ;;  %3473 = vlog2.f32 %v4029_v50 }
  0x8e   : >> { %v2090_v2 = vmax.f32 %v2088_v47, %v2089_v57  ;;  %v2099_v3 = vmax.f32 %v2097_v48, %v2098_v58  ;;  %v3462_v6 = vpop.eup %3461  ;;  %vm4050_vm7 = vmand %vm2078_vm5, %vm2039_vm2  ;;  %v4070_v21 = vadd.f32 1e-07, %v2238_v1  ;;  %3475 = vlog2.f32 %v4031_v51 }
  0x8f   : >> { %vm4063_vm8 = vmand %vm2079_vm6, %vm2040_vm3  ;;  %v3464_v14 = vpop.eup %3463  ;;  %v4079_v23 = vmul.f32 0.6931472, %v3462_v6  ;;  %3477 = vlog2.f32 %v4033_v52  ;;  %v4097_v34 = vadd.f32 1e-07, %v3944_v27  ;;  %v4100_v35 = vadd.f32 1e-07, %v3946_v28 }
  0x90   : >> { %vm2100_vm9 = vcmp.gt.f32.partialorder %v2090_v2, %v3952_v31  ;;  %vm2101_vm10 = vcmp.gt.f32.partialorder %v2099_v3, %v3954_v32  ;;  %v4082_v31 = vadd.f32 1e-07, %v3932_v22  ;;  %v4085_v32 = vadd.f32 1e-07, %v3942_v26  ;;  %v3466_v22 = vpop.eup %3465 }
  0x91   : >> { %vm4074_vm11 = vmand %vm2100_vm9, %vm2039_vm2  ;;  %v4094_v24 = vmul.f32 0.6931472, %v3464_v14  ;;  %3479 = vlog2.f32 %v4040_v62  ;;  %v4112_v26 = vadd.f32 1e-07, %v3956_v33  ;;  %v4115_v27 = vadd.f32 1e-07, %v3964_v38  ;;  %v3468_v45 = vpop.eup %3467 }
  0x92   : >> { %vm4089_vm12 = vmand %vm2101_vm10, %vm2040_vm3  ;;  %v2507_v36 = vsub.f32 %v2506_v5, %v2503_v4  ;;  %v3671_v37 = vmov 0.0   ;;  %3481 = vlog2.f32 %v4055_v53  ;;  %v4129_v33 = vadd.f32 1e-07, %v3966_v39  ;;  %v2114_v4 = vld [vmem:[#allocation2] sm:$0x3] }
  0x93   : >> { %vm4106_vm13 = vmand %vm4050_vm7, %vm4074_vm11  ;;  %v2553_v38 = vsub.f32 %v2506_v5, %v2552_v12  ;;  %3483 = vlog2.f32 %v4057_v54  ;;  %v4138_v47 = vadd.f32 1e-07, %v3968_v40  ;;  %v4144_v39 = vmul.f32 0.6931472, %v3466_v22  ;;  %v3470_v56 = vpop.eup %3469 }
  0x94   : >> { %vm4121_vm14 = vmand %vm4063_vm8, %vm4089_vm12  ;;  %v3274_v41 = vsel %vm4106_vm13, 1.0, %v3671_v37  ;;  %v2508_v48 = vmul.f32 %v2507_v36, %v2507_v36  ;;  %3485 = vlog2.f32 %v4003_v16  ;;  %v4146_v55 = vmul.f32 0.6931472, %v3468_v45 }
  0x95   : >> { %v3275_v46 = vsel %vm4121_vm14, 1.0, %v3671_v37  ;;  %vm2106_vm2 = vmxor %vm4074_vm11, %vm3672_vm15  ;;  %3487 = vlog2.f32 %v4018_v42  ;;  %v4156_v59 = vmul.f32 %v2553_v38, %v2553_v38  ;;  %v4168_v2 = vmul.f32 0.6931472, %v3470_v56  ;;  %v3472_v3 = vpop.eup %3471 }
  0x96   : >> { %v2121_v49 = vcombine.low %v3274_v41, %v3275_v46  ;;  %vm2107_vm3 = vmxor %vm4089_vm12, %vm3672_vm15  ;;  %v2510_v40 = vcombine.high %v2508_v48, %v2508_v48  ;;  %v2513_v58 = vsel %vm2512_vm4, %v2508_v48, 0.0  ;;  %3489 = vlog2.f32 %v4059_v61 }
  0x97   : >> { %vm4150_vm5 = vmand %vm4050_vm7, %vm2106_vm2  ;;  %3491 = vlog2.f32 %v4070_v21  ;;  %v2514_v5 = vrot.slane %v2513_v58, 4  ;;  %v3474_v14 = vpop.eup %3473  ;;  %v4184_v41 = vmul.f32 0.6931472, %v3472_v3  ;;  %v2602_v38 = vsub.s32 (%p2030_p10), 0, %v3916_v17 }
  0x98   : >> { %v2128_v60 = vrot.slane %v2121_v49, %v3949_v29  ;;  %vm4161_vm6 = vmand %vm4063_vm8, %vm2107_vm3  ;;  %v3276_v1 = vsel %vm4150_vm5, 1.0, %v3671_v37  ;;  %v4177_v12 = vsel %vm2512_vm4, %v2510_v40, 0.0  ;;  %3493 = vlog2.f32 %v4082_v31  ;;  %v3476_v8 = vpop.eup %3475 }
  0x99   : >> { %v3277_v6 = vsel %vm4161_vm6, 1.0, %v3671_v37  ;;  %vm2110_vm9 = vmxor %vm4050_vm7, %vm3672_vm15  ;;  %v4192_v45 = vmul.f32 0.6931472, %v3474_v14  ;;  %3495 = vlog2.f32 %v4085_v32  ;;  %v4195_v46 = vadd.f32 %v2514_v5, %v2513_v58  ;;  %v3478_v48 = vpop.eup %3477  ;;  %v2143_v58 = vld [vmem:[#allocation5] sm:$0x3] }
  0x9a   : >> { %v2135_v22 = vrot.slane %v2128_v60, %v3949_v29  ;;  %v2150_v36 = vcombine.low %v3276_v1, %v3277_v6  ;;  %vm2111_vm10 = vmxor %vm4063_vm8, %vm3672_vm15  ;;  %v4207_v60 = vmul.f32 0.6931472, %v3476_v8  ;;  %v4211_v6 = vmul.f32 0.6931472, %v3478_v48 }
  0x9b   : >> { %vm4188_vm7 = vmand %vm4074_vm11, %vm2110_vm9  ;;  %v3480_v1 = vpop.eup %3479  ;;  %3497 = vlog2.f32 %v4097_v34  ;;  %v2606_v15 = vsub.s32 (%p2030_p10), 1, %v3916_v17  ;;  %vm2610_vm11 = vcmask (%p2030_p10), 1040384  }
  0x9c   : >> { %v2137_v49 = vadd.f32 %v2135_v22, %v2114_v4  ;;  %v2157_v56 = vrot.slane %v2150_v36, %v3949_v29  ;;  %vm4201_vm8 = vmand %vm4089_vm12, %vm2111_vm10  ;;  %v3278_v40 = vsel %vm4188_vm7, 1.0, %v3671_v37  ;;  %v2257_v4 = vsub.f32 %v4192_v45, %v4079_v23  ;;  %v3482_v30 = vpop.eup %3481 }
  0x9d   : >> { %v3279_v3 = vsel %vm4201_vm8, 1.0, %v3671_v37  ;;  %v4219_v22 = vmul.f32 0.6931472, %v3480_v1  ;;  %v2258_v36 = vsub.f32 %v4207_v60, %v4094_v24  ;;  %v3484_v37 = vpop.eup %3483  ;;  %v4223_v8 = vmul.f32 0.6931472, %v3482_v30 }
  0x9e   : >> { %2142 = vst.msk [vmem:[#allocation2] sm:$0x3] %vm3850_vm0, %v2137_v49  ;;  %v2164_v5 = vrot.slane %v2157_v56, %v3949_v29  ;;  %v2175_v14 = vcombine.low %v3278_v40, %v3279_v3  ;;  %v2263_v48 = vmul.f32 %v2257_v4, %v4029_v50  ;;  %v2287_v23 = vmul.f32 %v2257_v4, %v3990_v0  ;;  %v3486_v9 = vpop.eup %3485  ;;  %v2168_v3 = vld [vmem:[#allocation8] sm:$0x3] }
  0x9f   : >> { %3499 = vlog2.f32 %v4100_v35  ;;  %v4229_v56 = vmul.f32 0.6931472, %v3484_v37  ;;  %v2264_v40 = vmul.f32 %v2258_v36, %v4031_v51  ;;  %v3488_v1 = vpop.eup %3487  ;;  %v2250_v24 = vmul.f32 0.6931472, %v3486_v9 }
  0xa0   : >> { %v2166_v20 = vadd.f32 %v2164_v5, %v2143_v58  ;;  %v2182_v49 = vrot.slane %v2175_v14, %v3949_v29  ;;  %v2288_v30 = vmul.f32 %v2258_v36, %v4000_v7  ;;  %v2377_v50 = vsub.f32 %v4144_v39, %v4192_v45  ;;  %v3490_v4 = vpop.eup %3489 }
  0xa1   : >> { %v2378_v0 = vsub.f32 %v4146_v55, %v4207_v60  ;;  %v2252_v5 = vmul.f32 0.6931472, %v3488_v1  ;;  %3501 = vlog2.f32 %v4112_v26  ;;  %v3492_v51 = vpop.eup %3491  ;;  %v2254_v7 = vmul.f32 0.6931472, %v3490_v4 }
  0xa2   : >> { %2167 = vst.msk [vmem:[#allocation5] sm:$0x3] %vm3850_vm0, %v2166_v20  ;;  %v2189_v58 = vrot.slane %v2182_v49, %v3949_v29  ;;  %v2259_v14 = vsub.f32 %v4211_v6, %v2250_v24  ;;  %v2383_v39 = vmul.f32 %v2377_v50, %v4007_v18  ;;  %v3494_v36 = vpop.eup %3493  ;;  %v2256_v11 = vmul.f32 0.6931472, %v3492_v51 }
  0xa3   : >> { %v2384_v55 = vmul.f32 %v2378_v0, %v4010_v19  ;;  %v2260_v20 = vsub.f32 %v4219_v22, %v2252_v5  ;;  %3503 = vlog2.f32 %v4115_v27  ;;  %v3496_v49 = vpop.eup %3495  ;;  %v2261_v1 = vsub.f32 %v4223_v8, %v2254_v7 }
  0xa4   : >> { %v2191_v37 = vadd.f32 %v2189_v58, %v2168_v3  ;;  %v2265_v9 = vmul.f32 %v2259_v14, %v4033_v52  ;;  %v2289_v4 = vmul.f32 %v2259_v14, %v4003_v16  ;;  %v2370_v13 = vmul.f32 0.6931472, %v3494_v36 }
  0xa5   : >> { %v2262_v18 = vsub.f32 %v4229_v56, %v2256_v11  ;;  %v2266_v19 = vmul.f32 %v2260_v20, %v4040_v62  ;;  %v2290_v3 = vmul.f32 %v2260_v20, %v4018_v42  ;;  %v2372_v24 = vmul.f32 0.6931472, %v3496_v49  ;;  %v3498_v50 = vpop.eup %3497 }
  0xa6   : >> { %2192 = vst.msk [vmem:[#allocation8] sm:$0x3] %vm3850_vm0, %v2191_v37  ;;  %v2267_v0 = vmul.f32 %v2261_v1, %v4055_v53  ;;  %v2269_v58 = vadd.f32 %v2265_v9, %v2263_v48  ;;  %v2291_v5 = vmul.f32 %v2261_v1, %v4059_v61  ;;  %v2293_v52 = vadd.f32 %v2289_v4, %v2287_v23 }
  0xa7   : >> { %v2268_v16 = vmul.f32 %v2262_v18, %v4057_v54  ;;  %v2278_v51 = vadd.f32 %v2266_v19, %v2264_v40  ;;  %v2292_v7 = vmul.f32 %v2262_v18, %v4070_v21  ;;  %v2302_v14 = vadd.f32 %v2290_v3, %v2288_v30 }
  0xa8   : >> { %v2270_v11 = vsel %vm2059_vm1, %v2267_v0, 0.0  ;;  %v2294_v62 = vsel %vm2059_vm1, %v2291_v5, 0.0  ;;  %v2374_v42 = vmul.f32 0.6931472, %v3498_v50  ;;  %v2379_v37 = vsub.f32 %v2370_v13, %v4211_v6 }
  0xa9   : >> { %v3500_v36 = vpop.eup %3499  ;;  %v2271_v20 = vadd.f32 %v2270_v11, %v2269_v58  ;;  %v2279_v53 = vsel %vm2059_vm1, %v2268_v16, 0.0  ;;  %v2295_v48 = vadd.f32 %v2294_v62, %v2293_v52  ;;  %v2303_v61 = vsel %vm2059_vm1, %v2292_v7, 0.0 }
  0xaa   : >> { %v2280_v23 = vadd.f32 %v2279_v53, %v2278_v51  ;;  %v2304_v54 = vadd.f32 %v2303_v61, %v2302_v14  ;;  %v2376_v40 = vmul.f32 0.6931472, %v3500_v36  ;;  %v2380_v21 = vsub.f32 %v2372_v24, %v4219_v22 }
  0xab   : >> { %v3502_v30 = vpop.eup %3501  ;;  %v2272_v9 = vrot.slane %v2271_v20, 4  ;;  %v2296_v49 = vrot.slane %v2295_v48, 4  ;;  %v2381_v1 = vsub.f32 %v2374_v42, %v4223_v8  ;;  %v2385_v4 = vmul.f32 %v2379_v37, %v4082_v31 }
  0xac   : >> { %v2281_v18 = vrot.slane %v2280_v23, 4  ;;  %v2305_v13 = vrot.slane %v2304_v54, 4  ;;  %v2382_v19 = vsub.f32 %v2376_v40, %v4229_v56  ;;  %v2386_v3 = vmul.f32 %v2380_v21, %v4085_v32 }
  0xad   : >> { %v3504_v50 = vpop.eup %3503  ;;  %v2273_v0 = vadd.f32 %v2272_v9, %v2271_v20  ;;  %v2297_v58 = vadd.f32 %v2296_v49, %v2295_v48  ;;  %v2387_v5 = vmul.f32 %v2381_v1, %v4097_v34  ;;  %v2389_v52 = vadd.f32 %v2385_v4, %v2383_v39 }
  0xae   : >> { %v2282_v24 = vadd.f32 %v2281_v18, %v2280_v23  ;;  %v2306_v16 = vadd.f32 %v2305_v13, %v2304_v54  ;;  %v2388_v51 = vmul.f32 %v2382_v19, %v4100_v35  ;;  %v2398_v7 = vadd.f32 %v2386_v3, %v2384_v55 }
  0xaf   : >> { %v2274_v14 = vrot.slane %v2273_v0, 2  ;;  %v2298_v36 = vrot.slane %v2297_v58, 2  ;;  %v2390_v31 = vsel %vm2059_vm1, %v2387_v5, 0.0  ;;  %v2441_v11 = vmul.f32 0.6931472, %v3502_v30 }
  0xb0   : >> { %v2283_v62 = vrot.slane %v2282_v24, 2  ;;  %v2307_v42 = vrot.slane %v2306_v16, 2  ;;  %v2391_v37 = vadd.f32 %v2390_v31, %v2389_v52  ;;  %v2399_v32 = vsel %vm2059_vm1, %v2388_v51, 0.0 }
  0xb1   : >> { %v2275_v20 = vadd.f32 %v2274_v14, %v2273_v0  ;;  %v2299_v53 = vadd.f32 %v2298_v36, %v2297_v58  ;;  %v2400_v48 = vadd.f32 %v2399_v32, %v2398_v7  ;;  %v2443_v34 = vmul.f32 0.6931472, %v3504_v50 }
  0xb2   : >> { %v2284_v39 = vadd.f32 %v2283_v62, %v2282_v24  ;;  %v2308_v61 = vadd.f32 %v2307_v42, %v2306_v16  ;;  %v2392_v23 = vrot.slane %v2391_v37, 4  ;;  %3505 = vlog2.f32 %v4129_v33 }
  0xb3   : >> { %v2276_v35 = vrot.slane %v2275_v20, 1  ;;  %v2300_v55 = vrot.slane %v2299_v53, 1  ;;  %v2401_v54 = vrot.slane %v2400_v48, 4  ;;  %3507 = vlog2.f32 %v4138_v47 }
  0xb4   : >> { %v2285_v40 = vrot.slane %v2284_v39, 1  ;;  %v2309_v21 = vrot.slane %v2308_v61, 1  ;;  %v2393_v30 = vadd.f32 %v2392_v23, %v2391_v37  ;;  %v2449_v9 = vsub.f32 %v4184_v41, %v4207_v60  ;;  %v2313_v37 = vld [vmem:[#allocation3] sm:$0x3] }
  0xb5   : >> { %v2277_v49 = vadd.f32 %v2276_v35, %v2275_v20  ;;  %v2301_v1 = vadd.f32 %v2300_v55, %v2299_v53  ;;  %v2402_v4 = vadd.f32 %v2401_v54, %v2400_v48  ;;  %v2450_v18 = vsub.f32 %v2441_v11, %v4211_v6  ;;  %v2336_v48 = vld [vmem:[#allocation4] sm:$0x3] }
  0xb6   : >> { %v2286_v13 = vadd.f32 %v2285_v40, %v2284_v39  ;;  %v2310_v19 = vadd.f32 %v2309_v21, %v2308_v61  ;;  %v2394_v3 = vrot.slane %v2393_v30, 2  ;;  %v2451_v50 = vsub.f32 %v2443_v34, %v4219_v22 }
  0xb7   : >> { %v2314_v0 = vsel %vm4106_vm13, %v2277_v49, 0.0  ;;  %v2311_v58 = vsub.f32 0.0, %v2301_v1  ;;  %v2403_v5 = vrot.slane %v2402_v4, 2  ;;  %v4447_v52 = vsub.f32 %v4168_v2, %v4192_v45 }
  0xb8   : >> { %v2315_v60 = vsel %vm4121_vm14, %v2286_v13, 0.0  ;;  %v2312_v24 = vsub.f32 0.0, %v2310_v19  ;;  %v2395_v6 = vadd.f32 %v2394_v3, %v2393_v30  ;;  %v2455_v16 = vmul.f32 %v2449_v9, %v4025_v44 }
  0xb9   : >> { %v2454_v41 = vmul.f32 %v4447_v52, %v4022_v43  ;;  %v2318_v51 = vcombine.low %v2314_v0, %v2315_v60  ;;  %v2337_v22 = vsel %vm4106_vm13, %v2311_v58, 0.0  ;;  %v2404_v7 = vadd.f32 %v2403_v5, %v2402_v4 }
  0xba   : >> { %v2456_v14 = vmul.f32 %v2450_v18, %v4112_v26  ;;  %v2338_v36 = vsel %vm4121_vm14, %v2312_v24, 0.0  ;;  %v2396_v31 = vrot.slane %v2395_v6, 1  ;;  %v2457_v43 = vmul.f32 %v2451_v50, %v4115_v27 }
  0xbb   : >> { %v2516_v2 = vrot.slane %v4195_v46, 2  ;;  %v2325_v45 = vrot.slane %v2318_v51, %v3949_v29  ;;  %v2341_v11 = vcombine.low %v2337_v22, %v2338_v36  ;;  %v2405_v62 = vrot.slane %v2404_v7, 1 }
  0xbc   : >> { %v2460_v44 = vadd.f32 %v2456_v14, %v2454_v41  ;;  %v3506_v42 = vpop.eup %3505  ;;  %v2397_v25 = vadd.f32 %v2396_v31, %v2395_v6  ;;  %v2469_v32 = vadd.f32 %v2457_v43, %v2455_v16  ;;  %v4448_v26 = vrot.slane %v4177_v12, 4 }
  0xbd   : >> { %v2517_v20 = vadd.f32 %v2516_v2, %v4195_v46  ;;  %v3508_v53 = vpop.eup %3507  ;;  %v2332_v27 = vrot.slane %v2325_v45, %v3949_v29  ;;  %v2348_v34 = vrot.slane %v2341_v11, %v3949_v29  ;;  %v2406_v39 = vadd.f32 %v2405_v62, %v2404_v7 }
  0xbe   : >> { %v2522_v28 = vadd.f32 %v4448_v26, %v4177_v12  ;;  %v2445_v61 = vmul.f32 0.6931472, %v3506_v42  ;;  %v2408_v23 = vsel %vm4150_vm5, %v2397_v25, 0.0  ;;  %v2447_v35 = vmul.f32 0.6931472, %v3508_v53 }
  0xbf   : >> { %v2518_v55 = vrot.slane %v2517_v20, 1  ;;  %v2334_v40 = vadd.f32 %v2332_v27, %v2313_v37  ;;  %v2355_v46 = vrot.slane %v2348_v34, %v3949_v29  ;;  %v2409_v12 = vsel %vm4161_vm6, %v2406_v39, 0.0 }
  0xc0   : >> { %v2523_v54 = vrot.slane %v2522_v28, 2  ;;  %v2452_v21 = vsub.f32 %v2445_v61, %v4223_v8  ;;  %v2412_v30 = vcombine.low %v2408_v23, %v2409_v12  ;;  %v2453_v9 = vsub.f32 %v2447_v35, %v4229_v56  ;;  %v2407_v56 = vld [vmem:[#allocation6] sm:$0x3] }
  0xc1   : >> { %v2519_v49 = vadd.f32 %v2518_v55, %v2517_v20  ;;  %2335 = vst.msk [vmem:[#allocation3] sm:$0x3] %vm3850_vm0, %v2334_v40  ;;  %v2357_v4 = vadd.f32 %v2355_v46, %v2336_v48  ;;  %v2556_v13 = vcombine.high %v4156_v59, %v4156_v59  ;;  %v2558_v19 = vsel %vm2512_vm4, %v4156_v59, 0.0 }
  0xc2   : >> { %v2524_v1 = vadd.f32 %v2523_v54, %v2522_v28  ;;  %v2458_v18 = vmul.f32 %v2452_v21, %v4129_v33  ;;  %v2419_v3 = vrot.slane %v2412_v30, %v3949_v29  ;;  %v2459_v8 = vmul.f32 %v2453_v9, %v4138_v47  ;;  %v2572_v21 = vld [vmem:[#allocation10] sm:$0x3] }
  0xc3   : >> { %2358 = vst.msk [vmem:[#allocation4] sm:$0x3] %vm3850_vm0, %v2357_v4  ;;  %v2528_v33 = vsel %vm4150_vm5, %v2519_v49, 0.0  ;;  %v2559_v58 = vrot.slane %v2558_v19, 4  ;;  %v2565_v5 = vsel %vm2512_vm4, %v2556_v13, 0.0  ;;  %vm2776_vm12 = vcmask (%p2030_p10), 1042432  }
  0xc4   : >> { %v2525_v50 = vrot.slane %v2524_v1, 1  ;;  %v2461_v0 = vsel %vm2059_vm1, %v2458_v18, 0.0  ;;  %v2426_v52 = vrot.slane %v2419_v3, %v3949_v29  ;;  %v2470_v41 = vsel %vm2059_vm1, %v2459_v8, 0.0  ;;  %v2478_v49 = vld [vmem:[#allocation9] sm:$0x3] }
  0xc5   : >> { %v2462_v59 = vadd.f32 %v2461_v0, %v2460_v44  ;;  %v2471_v47 = vadd.f32 %v2470_v41, %v2469_v32  ;;  %v2560_v24 = vadd.f32 %v2559_v58, %v2558_v19  ;;  %v2566_v6 = vrot.slane %v2565_v5, 4  ;;  %v2527_v44 = vld [vmem:[#allocation7] sm:$0x3]  ;;  %v2598_v13 = vld [vmem:[#allocation2] sm:$0x3] (%p2030_p10) }
  0xc6   : >> { %v2526_v60 = vadd.f32 %v2525_v50, %v2524_v1  ;;  %v2428_v16 = vadd.f32 %v2426_v52, %v2407_v56  ;;  %v2650_v3 = vld [vmem:[#allocation5] sm:$0x3] (%p2030_p10)  ;;  %v2603_v56 = vrot.slane (%p2030_p10), %v2598_v13, %v2602_v38  ;;  %v2607_v0 = vrot.slane (%p2030_p10), %v2598_v13, %v2606_v15 }
  0xc7   : >> { %v2463_v51 = vrot.slane %v2462_v59, 4  ;;  %v2472_v7 = vrot.slane %v2471_v47, 4  ;;  %v2561_v14 = vrot.slane %v2560_v24, 2  ;;  %v2567_v36 = vadd.f32 %v2566_v6, %v2565_v5 }
  0xc8   : >> { %v2529_v22 = vsel %vm4161_vm6, %v2526_v60, 0.0  ;;  %2429 = vst.msk [vmem:[#allocation6] sm:$0x3] %vm3850_vm0, %v2428_v16  ;;  %v2655_v5 = vrot.slane (%p2030_p10), %v2650_v3, %v2602_v38  ;;  %v2659_v52 = vrot.slane (%p2030_p10), %v2650_v3, %v2606_v15  ;;  %v2611_v17 = vsel (%p2030_p10), %vm2610_vm11, %v2603_v56, 0.0 }
  0xc9   : >> { %v2532_v57 = vcombine.low %v2528_v33, %v2529_v22  ;;  %v2464_v31 = vadd.f32 %v2463_v51, %v2462_v59  ;;  %v2473_v43 = vadd.f32 %v2472_v7, %v2471_v47  ;;  %v2562_v45 = vadd.f32 %v2561_v14, %v2560_v24  ;;  %v2701_v22 = vld [vmem:[#allocation8] sm:$0x3] (%p2030_p10) }
  0xca   : >> { %v2568_v11 = vrot.slane %v2567_v36, 2  ;;  %v2633_v19 = vld [vmem:[#allocation4] sm:$0x3] (%p2030_p10)  ;;  %v2612_v60 = vsel (%p2030_p10), %vm2610_vm11, %v2607_v0, 0.0  ;;  %v2663_v14 = vsel (%p2030_p10), %vm2610_vm11, %v2659_v52, 0.0  ;;  %vm2782_vm13 = vcmask (%p2030_p10), 1045504  }
  0xcb   : >> { %v2539_v2 = vrot.slane %v2532_v57, %v3949_v29  ;;  %v2465_v62 = vrot.slane %v2464_v31, 2  ;;  %v2474_v42 = vrot.slane %v2473_v43, 2  ;;  %v2563_v63 = vrot.slane %v2562_v45, 1 }
  0xcc   : >> { %v2569_v25 = vadd.f32 %v2568_v11, %v2567_v36  ;;  %v2638_v33 = vrot.slane (%p2030_p10), %v2633_v19, %v2602_v38  ;;  %v2642_v58 = vrot.slane (%p2030_p10), %v2633_v19, %v2606_v15  ;;  %v2613_v6 = vadd.f32 (%p2030_p10), %v2612_v60, %v2611_v17 }
  0xcd   : >> { %v2546_v37 = vrot.slane %v2539_v2, %v3949_v29  ;;  %v2466_v32 = vadd.f32 %v2465_v62, %v2464_v31  ;;  %v2475_v20 = vadd.f32 %v2474_v42, %v2473_v43  ;;  %v2564_v28 = vadd.f32 %v2563_v63, %v2562_v45 }
  0xce   : >> { %v2570_v53 = vrot.slane %v2569_v25, 1  ;;  %v2645_v16 = vsel (%p2030_p10), %vm2610_vm11, %v2638_v33, 0.0  ;;  %v2646_v51 = vsel (%p2030_p10), %vm2610_vm11, %v2642_v58, 0.0  ;;  %v2662_v57 = vsel (%p2030_p10), %vm2610_vm11, %v2655_v5, 0.0  ;;  %2614 = vadd.xlane.f32.xlu1 (%p2030_p10), %v2613_v6 }
  0xcf   : >> { %v2548_v26 = vadd.f32 %v2546_v37, %v2527_v44  ;;  %v2467_v27 = vrot.slane %v2466_v32, 1  ;;  %v2476_v48 = vrot.slane %v2475_v20, 1  ;;  %v2573_v39 = vsel %vm4188_vm7, %v2564_v28, 0.0  ;;  %v2667_v59 = vld [vmem:[#allocation6] sm:$0x3] (%p2030_p10) }
  0xd0   : >> { %v2571_v34 = vadd.f32 %v2570_v53, %v2569_v25  ;;  %v2647_v7 = vadd.f32 (%p2030_p10), %v2646_v51, %v2645_v16  ;;  %v2672_v36 = vrot.slane (%p2030_p10), %v2667_v59, %v2602_v38  ;;  %v2664_v43 = vadd.f32 (%p2030_p10), %v2663_v14, %v2662_v57 }
  0xd1   : >> { %2549 = vst.msk [vmem:[#allocation7] sm:$0x3] %vm3850_vm0, %v2548_v26  ;;  %v2468_v61 = vadd.f32 %v2467_v27, %v2466_v32  ;;  %v2477_v23 = vadd.f32 %v2476_v48, %v2475_v20  ;;  %v2676_v2 = vrot.slane (%p2030_p10), %v2667_v59, %v2606_v15  ;;  %v2706_v44 = vrot.slane (%p2030_p10), %v2701_v22, %v2602_v38 }
  0xd2   : >> { %v2574_v35 = vsel %vm4201_vm8, %v2571_v34, 0.0  ;;  %v2679_v11 = vsel (%p2030_p10), %vm2610_vm11, %v2672_v36, 0.0  ;;  %v2710_v42 = vrot.slane (%p2030_p10), %v2701_v22, %v2606_v15  ;;  %2665 = vadd.xlane.f32.xlu1 (%p2030_p10), %v2664_v43  ;;  %vm2784_vm14 = vcmask (%p2030_p10), 1046528  }
  0xd3   : >> { %v2479_v55 = vsel %vm4188_vm7, %v2468_v61, 0.0  ;;  %v2577_v54 = vcombine.low %v2573_v39, %v2574_v35  ;;  %v2480_v40 = vsel %vm4201_vm8, %v2477_v23, 0.0  ;;  %v2680_v37 = vsel (%p2030_p10), %vm2610_vm11, %v2676_v2, 0.0 }
  0xd4   : >> { %v2483_v46 = vcombine.low %v2479_v55, %v2480_v40  ;;  %v2681_v28 = vadd.f32 (%p2030_p10), %v2680_v37, %v2679_v11  ;;  %v2713_v27 = vsel (%p2030_p10), %vm2610_vm11, %v2706_v44, 0.0  ;;  %v2714_v48 = vsel (%p2030_p10), %vm2610_vm11, %v2710_v42, 0.0 }
  0xd5   : >> { %v2584_v12 = vrot.slane %v2577_v54, %v3949_v29  ;;  %v2715_v35 = vadd.f32 (%p2030_p10), %v2714_v48, %v2713_v27 }
  0xd6   : >> { %v2490_v30 = vrot.slane %v2483_v46, %v3949_v29  ;;  %2032 = sbr.rel (!%p2030_p10) target bundleno = 117 (0x75), region = 513 }
  0xd7   : >> { %v2591_v9 = vrot.slane %v2584_v12, %v3949_v29 }
  0xd8   : >> { %v2497_v1 = vrot.slane %v2490_v30, %v3949_v29  ;;  %v2616_v29 = vld [vmem:[#allocation3] sm:$0x3] (%p2030_p10)  ;;  %v2684_v47 = vld [vmem:[#allocation7] sm:$0x3] (%p2030_p10) }
  0xd9   : >> { %v2593_v4 = vadd.f32 %v2591_v9, %v2572_v21  ;;  %v2621_v8 = vrot.slane (%p2030_p10), %v2616_v29, %v2602_v38  ;;  %v2625_v50 = vrot.slane (%p2030_p10), %v2616_v29, %v2606_v15  ;;  %v2689_v45 = vrot.slane (%p2030_p10), %v2684_v47, %v2602_v38 }
  0xda   : >> { %v2499_v18 = vadd.f32 %v2497_v1, %v2478_v49  ;;  %v2693_v62 = vrot.slane (%p2030_p10), %v2684_v47, %v2606_v15 }
  0xdb   : >> { %2594 = vst.msk [vmem:[#allocation10] sm:$0x3] %vm3850_vm0, %v2593_v4  ;;  %v2628_v41 = vsel (%p2030_p10), %vm2610_vm11, %v2621_v8, 0.0  ;;  %v2629_v10 = vsel (%p2030_p10), %vm2610_vm11, %v2625_v50, 0.0  ;;  %v2696_v63 = vsel (%p2030_p10), %vm2610_vm11, %v2689_v45, 0.0 }
  0xdc   : >> { %2500 = vst.msk [vmem:[#allocation9] sm:$0x3] %vm3850_vm0, %v2499_v18  ;;  %v2630_v24 = vadd.f32 (%p2030_p10), %v2629_v10, %v2628_v41  ;;  %v2697_v26 = vsel (%p2030_p10), %vm2610_vm11, %v2693_v62, 0.0  ;;  %vm2774_vm0 = vcmask (%p2030_p10), 1041408  }
  0xdd   : > { %v2698_v53 = vadd.f32 %v2697_v26, %v2696_v63 }
  0xde   : > { %2631 = vadd.xlane.f32.xlu0 %v2630_v24 }
  0xdf   : > { %2699 = vadd.xlane.f32.xlu1 %v2698_v53 }
  0xe2   : > { %v2735_v20 = vld [vmem:[#allocation10] sm:$0x3]  ;;  %2648 = vadd.xlane.f32.xlu0 %v2647_v7 }
  0xe3   : > { %v2718_v31 = vld [vmem:[#allocation9] sm:$0x3]  ;;  %v2740_v61 = vrot.slane %v2735_v20, %v2602_v38  ;;  %v2744_v23 = vrot.slane %v2735_v20, %v2606_v15 }
  0xe4   : > { %v2723_v25 = vrot.slane %v2718_v31, %v2602_v38  ;;  %v2727_v32 = vrot.slane %v2718_v31, %v2606_v15 }
  0xe5   : > { %v2747_v54 = vsel %vm2610_vm11, %v2740_v61, 0.0  ;;  %v2748_v40 = vsel %vm2610_vm11, %v2744_v23, 0.0 }
  0xe6   : > { %v2730_v34 = vsel %vm2610_vm11, %v2723_v25, 0.0  ;;  %v2731_v39 = vsel %vm2610_vm11, %v2727_v32, 0.0  ;;  %2682 = vadd.xlane.f32.xlu0 %v2681_v28  ;;  %v2749_v46 = vadd.f32 %v2748_v40, %v2747_v54 }
  0xe7   : > { %v2732_v55 = vadd.f32 %v2731_v39, %v2730_v34 }
  0xe9   : > { %2733 = vadd.xlane.f32.xlu1 %v2732_v55 }
  0xea   : > { %2716 = vadd.xlane.f32.xlu0 %v2715_v35 }
  0xee   : > { %2750 = vadd.xlane.f32.xlu0 %v2749_v46 }
 0x15b   : > { %v2615_v21 = vpop.xlane.xlu1 %2614 }
 0x15f   : > { %v2666_v49 = vpop.xlane.xlu1 %2665 }
 0x160   : > { %v2759_v18 = vrot.slane %v2666_v49, 5 }
 0x16b   : > { %v2632_v12 = vpop.xlane.xlu0 %2631 }
 0x16c   : > { %v2753_v30 = vrot.slane %v2632_v12, 7  ;;  %v2700_v29 = vpop.xlane.xlu1 %2699 }
 0x16d   : > { %v2765_v3 = vrot.slane %v2700_v29, 3 }
 0x16e   : > { %v2773_v4 = vsel %vm2610_vm11, %v2615_v21, %v2753_v30 }
 0x16f   : > { %v2649_v9 = vpop.xlane.xlu0 %2648 }
 0x170   : > { %v2756_v1 = vrot.slane %v2649_v9, 6 }
 0x172   : > { %v2775_v38 = vsel %vm2774_vm0, %v2773_v4, %v2756_v1 }
 0x173   : > { %v2683_v15 = vpop.xlane.xlu0 %2682  ;;  %v2777_v19 = vsel %vm2776_vm12, %v2775_v38, %v2759_v18 }
 0x174   : > { %v2762_v13 = vrot.slane %v2683_v15, 4 }
 0x176   : > { %v2779_v8 = vsel %vm2512_vm4, %v2777_v19, %v2762_v13  ;;  %v2734_v56 = vpop.xlane.xlu1 %2733 }
 0x177   : > { %v2717_v50 = vpop.xlane.xlu0 %2716  ;;  %v2771_v33 = vrot.slane %v2734_v56, 1  ;;  %v2781_v58 = vsel %vm2059_vm1, %v2779_v8, %v2765_v3 }
 0x178   : > { %v2768_v0 = vrot.slane %v2717_v50, 2 }
 0x17a   : > { %v2783_v5 = vsel %vm2782_vm13, %v2781_v58, %v2768_v0 }
 0x17b   : > { %v2785_v52 = vsel %vm2784_vm14, %v2783_v5, %v2771_v33  ;;  %v2751_v59 = vpop.xlane.xlu0 %2750 }
 0x17c   : > { %2786 = vst [vmem:[%s3896_s16] sm:$0xff] %v2785_v52  ;;  %2787 = vst [vmem:[%s3896_s16 + $0x8] sm:$0x1] %v2751_v59 }
 0x17d PF: > { %s18_s9 = sadd.s32 1, %s3615_s9   ;;  %s4449_s26 = smov %s3595_s27 }
 0x17e   : > { %p15_p11 = scmp.ge.s32.totalorder %s18_s9, 6   ;;  %s4450_s27 = smov %s3784_s11 }
 0x17f   : > { %s4451_s28 = smov %s3603_s29  ;;  %s4452_s29 = smov %s3769_s18 }
 0x180   : > { %s4453_s30 = smov %s3611_s8  ;;  %s4454_s8 = smov %s4456_s0 }
 0x181   :  { %17 = sbr.rel (!%p15_p11) target bundleno = 9 (0x9), region = 524 }

</bundles_post_ra>
